<compile_context>
chip_gen: v7x
topology: tpu7x:2x2x1
jax: 0.10.0
libtpu: 0.0.40
codegen_flags: <defaults>
</compile_context>

<pallas_src>
import jax
import jax.numpy as jnp
from jax import lax
from jax.experimental import pallas as pl
from jax.experimental.pallas import tpu as pltpu

EPS = 1e-5  # BatchNorm1d default eps


# ---------------------------------------------------------------------------
# Fused Pallas kernel (whole network in one pallas_call)
# ---------------------------------------------------------------------------
def build_fused_net(B, L, C_in, block_cfgs, out_channels, dtype):
    """block_cfgs: list of static dicts
         dict(cin, cout, dilation, k_max, HP, has_ds)
       Ref order: x, then per block: [ds_w, ds_shift]?, W0, s0, W1, s1, out."""

    def kernel(*refs):
        x_ref = refs[0]
        out_ref = refs[-1]
        cur = x_ref[0].astype(jnp.float32)            # (L, C_in), f32 working copy
        pos = 1
        for cfg in block_cfgs:
            d, HP, k_max = cfg["dilation"], cfg["HP"], cfg["k_max"]

            # --- residual path (DownSample1d 'norm': 1x1 conv + BN, folded) ---
            if cfg["has_ds"]:
                wds_ref, sds_ref = refs[pos], refs[pos + 1]
                pos += 2
                res = (jnp.dot(cur.astype(jnp.bfloat16), wds_ref[...],
                               preferred_element_type=jnp.float32)
                       + sds_ref[...])
            else:
                res = cur
            w0_ref, s0_ref, w1_ref, s1_ref = refs[pos:pos + 4]
            pos += 4

            def conv_layer(x_f32, w_ref, s_ref):
                # combined dilated multi-branch conv + folded BN + ReLU
                cin = x_f32.shape[-1]
                cout = w_ref.shape[-1]
                zpad = jnp.zeros((HP, cin), jnp.float32)
                # In-kernel halo padding (stays in VMEM; no wrapper jnp.pad).
                xp = jnp.concatenate([zpad, x_f32, zpad],
                                     axis=0).astype(jnp.bfloat16)   # (L+2HP, cin)
                acc = jnp.zeros((L, cout), jnp.float32)
                for jj in range(k_max):           # static taps, offsets jj*d
                    # NOTE: tap starts are generally not 8-aligned; at L<=24
                    # the sublane shifts are negligible next to the matmuls.
                    acc = acc + jnp.dot(xp[jj * d:jj * d + L, :], w_ref[jj],
                                        preferred_element_type=jnp.float32)
                return jnp.maximum(acc + s_ref[...], 0.0)

            y = conv_layer(cur, w0_ref, s0_ref)   # conv layer 0 (+Dropout = id)
            y = conv_layer(y, w1_ref, s1_ref)     # conv layer 1 (+Dropout = id)
            cur = jnp.maximum(y + res, 0.0)       # block epilogue (final ReLU)
        out_ref[0] = cur.astype(out_ref.dtype)

    in_specs = [pl.BlockSpec((1, L, C_in), lambda b: (b, 0, 0))]
    for cfg in block_cfgs:
        cin, cout, k_max = cfg["cin"], cfg["cout"], cfg["k_max"]
        if cfg["has_ds"]:
            in_specs.append(pl.BlockSpec((cin, cout), lambda b: (0, 0)))
            in_specs.append(pl.BlockSpec((1, cout), lambda b: (0, 0)))
        in_specs.append(pl.BlockSpec((k_max, cin, cout), lambda b: (0, 0, 0)))
        in_specs.append(pl.BlockSpec((1, cout), lambda b: (0, 0)))
        in_specs.append(pl.BlockSpec((k_max, cout, cout), lambda b: (0, 0, 0)))
        in_specs.append(pl.BlockSpec((1, cout), lambda b: (0, 0)))

    return pl.pallas_call(
        kernel,
        out_shape=jax.ShapeDtypeStruct((B, L, out_channels), dtype),
        grid_spec=pltpu.PrefetchScalarGridSpec(
            num_scalar_prefetch=0,
            grid=(B,),
            in_specs=in_specs,
            out_specs=pl.BlockSpec((1, L, out_channels), lambda b: (b, 0, 0)),
        ),
        compiler_params=pltpu.CompilerParams(
            dimension_semantics=("parallel",)),   # v7x: one batch per TC
    )


# ---------------------------------------------------------------------------
# Deterministic parameter construction (synthetic, not a checkpoint load)
# ---------------------------------------------------------------------------
def _bn_fold(bias, gamma, beta, mean, var):
    scale = gamma / jnp.sqrt(var + EPS)          # (C,)
    shift = beta + (bias - mean) * scale         # (C,)
    return scale, shift


def _rand_conv_bn(key, c_out, c_in, k):
    kw, kb, kg, kbe, km, kv = jax.random.split(key, 6)
    w = jax.random.normal(kw, (c_out, c_in, k), jnp.float32) / jnp.sqrt(c_in * k)
    b = 0.1 * jax.random.normal(kb, (c_out,), jnp.float32)
    gamma = 1.0 + 0.1 * jax.random.normal(kg, (c_out,), jnp.float32)
    beta = 0.1 * jax.random.normal(kbe, (c_out,), jnp.float32)
    mean = 0.1 * jax.random.normal(km, (c_out,), jnp.float32)
    var = 1.0 + 0.1 * jnp.abs(jax.random.normal(kv, (c_out,), jnp.float32))
    return dict(w=w, b=b, gamma=gamma, beta=beta, mean=mean, var=var)


def init_model(key, in_channels, hidden_channels, kernels_size):
    """Builds raw params (for the reference) and fused/folded Pallas params:
       per layer one (k_max, Cin, Cout) bf16 tap tensor with BN scale folded
       into the weights, plus a (1, Cout) f32 shift."""
    blocks = []
    nb = len(kernels_size)
    k_max = max(kernels_size)
    for block_idx, out_planes in enumerate(hidden_channels):
        d = 2 ** block_idx
        in_planes = in_channels if block_idx == 0 else hidden_channels[block_idx - 1]
        assert out_planes % nb == 0
        bc = out_planes // nb
        hps = [((k - 1) * d) // 2 for k in kernels_size]
        for k in kernels_size:
            # symmetric Chomp1d split P//2 / P//2 only length-preserving for even P
            assert (k - 1) * d % 2 == 0, "odd kernel sizes required"
        HP = max(hps)
        assert all((HP - hp) % d == 0 for hp in hps)

        layers_raw, layers_fused = [], []
        for conv_idx in range(2):                               # conv_num = 2
            cin = in_planes if conv_idx == 0 else out_planes
            branches = []
            W = jnp.zeros((k_max, cin, out_planes), jnp.float32)
            shift_all = jnp.zeros((out_planes,), jnp.float32)
            for bi, k in enumerate(kernels_size):
                key, sub = jax.random.split(key)
                raw = _rand_conv_bn(sub, bc, cin, k)
                branches.append(raw)
                scale, shift = _bn_fold(raw["b"], raw["gamma"], raw["beta"],
                                        raw["mean"], raw["var"])
                # (k, Cin, bc) with BN scale folded into the weights
                w_kcb = jnp.transpose(raw["w"], (2, 1, 0)) * scale[None, None, :]
                off = (HP - hps[bi]) // d        # tap offset on shared dilation grid
                W = W.at[off:off + k, :, bi * bc:(bi + 1) * bc].set(w_kcb)
                shift_all = shift_all.at[bi * bc:(bi + 1) * bc].set(shift)
            layers_raw.append(branches)
            layers_fused.append((W.astype(jnp.bfloat16), shift_all[None, :]))

        downsample_raw, ds_fused = None, None
        # Exactly the PyTorch condition (stride == 1):
        #   stride != 1 or in_channels // branches_num != out_channels
        if in_planes // nb != out_planes:
            # TODO(synk): DownSample1d source not provided; assumed 'norm' ==
            # Conv1d(kernel_size=1, stride) + BatchNorm1d.
            key, sub = jax.random.split(key)
            raw = _rand_conv_bn(sub, out_planes, in_planes, 1)
            downsample_raw = raw
            scale, shift = _bn_fold(raw["b"], raw["gamma"], raw["beta"],
                                    raw["mean"], raw["var"])
            wds = raw["w"][:, :, 0].T * scale[None, :]          # (Cin, Cout)
            ds_fused = (wds.astype(jnp.bfloat16), shift[None, :])

        blocks.append(dict(dilation=d, in_planes=in_planes, out_planes=out_planes,
                           k_max=k_max, HP=HP,
                           layers_raw=layers_raw, downsample_raw=downsample_raw,
                           layers_fused=layers_fused, ds_fused=ds_fused))
    return blocks


# ---------------------------------------------------------------------------
# Forward pass (single fused Pallas kernel)
# ---------------------------------------------------------------------------
def forward_pallas(x_ncl, blocks, length=None):
    x = jnp.transpose(x_ncl, (0, 2, 1))                  # (B, L, C) channels-last
    B, L, C_in = x.shape
    block_cfgs = [dict(cin=blk["in_planes"], cout=blk["out_planes"],
                       dilation=blk["dilation"], k_max=blk["k_max"],
                       HP=blk["HP"], has_ds=blk["ds_fused"] is not None)
                  for blk in blocks]
    args = [x]
    for blk in blocks:
        if blk["ds_fused"] is not None:
            args += list(blk["ds_fused"])
        for W, s in blk["layers_fused"]:
            args += [W, s]
    fused = build_fused_net(B, L, C_in, block_cfgs,
                            blocks[-1]["out_planes"], x.dtype)
    out = fused(*args)
    return jnp.transpose(out, (0, 2, 1)), length          # back to (B, C, L)


# ---------------------------------------------------------------------------
# Pure-JAX reference (mirrors the PyTorch forward exactly, f32 everywhere)
# ---------------------------------------------------------------------------
def _conv_bn_chomp_relu_ref(x, raw, dilation):
    k = raw["w"].shape[-1]
    P = (k - 1) * dilation
    y = lax.conv_general_dilated(x, raw["w"], window_strides=(1,),
                                 padding=[(P, P)], rhs_dilation=(dilation,),
                                 dimension_numbers=("NCH", "OIH", "NCH"))
    y = y + raw["b"][None, :, None]
    scale = raw["gamma"] / jnp.sqrt(raw["var"] + EPS)
    y = (y - raw["mean"][None, :, None]) * scale[None, :, None] + raw["beta"][None, :, None]
    y = y[:, :, P // 2: y.shape[-1] - P // 2]            # symmetric Chomp1d
    return jnp.maximum(y, 0.0)


def _downsample_ref(x, raw):
    y = lax.conv_general_dilated(x, raw["w"], (1,), "VALID",
                                 dimension_numbers=("NCH", "OIH", "NCH"))
    y = y + raw["b"][None, :, None]
    scale = raw["gamma"] / jnp.sqrt(raw["var"] + EPS)
    return (y - raw["mean"][None, :, None]) * scale[None, :, None] + raw["beta"][None, :, None]


def forward_ref(x, blocks):
    for blk in blocks:
        residual = (_downsample_ref(x, blk["downsample_raw"])
                    if blk["downsample_raw"] is not None else x)
        y = x
        for layer in blk["layers_raw"]:
            outs = [_conv_bn_chomp_relu_ref(y, raw, blk["dilation"]) for raw in layer]
            y = jnp.concatenate(outs, axis=1)
        x = jnp.maximum(y + residual, 0.0)
    return x


# ---------------------------------------------------------------------------
if __name__ == "__main__":
    key = jax.random.PRNGKey(0)
    B, C_in, L = 2, 16, 16
    hidden_channels = [32, 32]
    kernels_size = [3, 5]

    key, kx, kp = jax.random.split(key, 3)
    x = jax.random.normal(kx, (B, C_in, L), jnp.float32)   # PyTorch NCL layout
    blocks = init_model(kp, C_in, hidden_channels, kernels_size)

    out, _ = forward_pallas(x, blocks, length=None)
    out = jax.block_until_ready(out)

    ref = forward_ref(x, blocks)
    assert out.shape == (B, hidden_channels[-1], L), out.shape
    # bf16 MXU operands with f32 accumulation -> ~1e-2 level error vs f32 ref.
    if not jnp.allclose(out, ref, atol=5e-2, rtol=5e-2):
        raise AssertionError(
            f"mismatch vs reference, max |err| = {jnp.max(jnp.abs(out - ref))}")
    print("KERNEL_OK")
</pallas_src>

<mosaic_0001>
module attributes {stable_mosaic.version = 11 : i64} {
  func.func @kernel(%arg0: i32, %arg1: memref<1x16x16xf32, #tpu.memory_space<vmem>>, %arg2: memref<16x32xbf16, #tpu.memory_space<vmem>>, %arg3: memref<1x32xf32, #tpu.memory_space<vmem>>, %arg4: memref<5x16x32xbf16, #tpu.memory_space<vmem>>, %arg5: memref<1x32xf32, #tpu.memory_space<vmem>>, %arg6: memref<5x32x32xbf16, #tpu.memory_space<vmem>>, %arg7: memref<1x32xf32, #tpu.memory_space<vmem>>, %arg8: memref<32x32xbf16, #tpu.memory_space<vmem>>, %arg9: memref<1x32xf32, #tpu.memory_space<vmem>>, %arg10: memref<5x32x32xbf16, #tpu.memory_space<vmem>>, %arg11: memref<1x32xf32, #tpu.memory_space<vmem>>, %arg12: memref<5x32x32xbf16, #tpu.memory_space<vmem>>, %arg13: memref<1x32xf32, #tpu.memory_space<vmem>>, %arg14: memref<1x16x32xf32, #tpu.memory_space<vmem>>) attributes {dimension_semantics = [#tpu.dimension_semantics<parallel>], iteration_bounds = array<i64: 2>, scalar_prefetch = 0 : i64, scratch_operands = 0 : i64, tpu.core_type = #tpu.core_type<tc>, window_params = [{transform_indices = @transform_0, window_bounds = array<i64: 1, 16, 16>}, {pipeline_mode = #tpu.pipeline_mode<synchronous>, transform_indices = @transform_1, window_bounds = array<i64: 16, 32>}, {pipeline_mode = #tpu.pipeline_mode<synchronous>, transform_indices = @transform_2, window_bounds = array<i64: 1, 32>}, {pipeline_mode = #tpu.pipeline_mode<synchronous>, transform_indices = @transform_3, window_bounds = array<i64: 5, 16, 32>}, {pipeline_mode = #tpu.pipeline_mode<synchronous>, transform_indices = @transform_4, window_bounds = array<i64: 1, 32>}, {pipeline_mode = #tpu.pipeline_mode<synchronous>, transform_indices = @transform_5, window_bounds = array<i64: 5, 32, 32>}, {pipeline_mode = #tpu.pipeline_mode<synchronous>, transform_indices = @transform_6, window_bounds = array<i64: 1, 32>}, {pipeline_mode = #tpu.pipeline_mode<synchronous>, transform_indices = @transform_7, window_bounds = array<i64: 32, 32>}, {pipeline_mode = #tpu.pipeline_mode<synchronous>, transform_indices = @transform_8, window_bounds = array<i64: 1, 32>}, {pipeline_mode = #tpu.pipeline_mode<synchronous>, transform_indices = @transform_9, window_bounds = array<i64: 5, 32, 32>}, {pipeline_mode = #tpu.pipeline_mode<synchronous>, transform_indices = @transform_10, window_bounds = array<i64: 1, 32>}, {pipeline_mode = #tpu.pipeline_mode<synchronous>, transform_indices = @transform_11, window_bounds = array<i64: 5, 32, 32>}, {pipeline_mode = #tpu.pipeline_mode<synchronous>, transform_indices = @transform_12, window_bounds = array<i64: 1, 32>}, {transform_indices = @transform_13, window_bounds = array<i64: 1, 16, 32>}]} {
    %c0 = arith.constant 0 : index
    %c0_0 = arith.constant 0 : index
    %c0_1 = arith.constant 0 : index
    %0 = vector.load %arg1[%c0, %c0_0, %c0_1] : memref<1x16x16xf32, #tpu.memory_space<vmem>>, vector<1x16x16xf32>
    %1 = vector.shape_cast %0 : vector<1x16x16xf32> to vector<16x16xf32>
    %2 = arith.truncf %1 : vector<16x16xf32> to vector<16x16xbf16>
    %c0_2 = arith.constant 0 : index
    %c0_3 = arith.constant 0 : index
    %3 = vector.load %arg2[%c0_2, %c0_3] : memref<16x32xbf16, #tpu.memory_space<vmem>>, vector<16x32xbf16>
    %cst = arith.constant dense<0.000000e+00> : vector<16x32xf32>
    %4 = tpu.matmul %2, %3, %cst {dimension_numbers = #tpu.dot_dimension_numbers<[1], [0], [0], [1], [0, 0, 1, 1], [], []>} : vector<16x16xbf16>, vector<16x32xbf16>, vector<16x32xf32> -> vector<16x32xf32>
    %c0_4 = arith.constant 0 : index
    %c0_5 = arith.constant 0 : index
    %5 = vector.load %arg3[%c0_4, %c0_5] : memref<1x32xf32, #tpu.memory_space<vmem>>, vector<1x32xf32>
    %6 = vector.broadcast %5 : vector<1x32xf32> to vector<16x32xf32>
    %7 = arith.addf %4, %6 : vector<16x32xf32>
    %cst_6 = arith.constant 0.000000e+00 : f32
    %8 = vector.broadcast %cst_6 : f32 to vector<2x16xf32>
    %9 = tpu.concatenate %8, %1, %8 in 0 : vector<2x16xf32>, vector<16x16xf32>, vector<2x16xf32> -> vector<20x16xf32>
    %10 = arith.truncf %9 : vector<20x16xf32> to vector<20x16xbf16>
    %cst_7 = arith.constant 0.000000e+00 : f32
    %11 = vector.broadcast %cst_7 : f32 to vector<16x32xf32>
    %12 = vector.extract_strided_slice %10 {offsets = [0, 0], sizes = [16, 16], strides = [1, 1]} : vector<20x16xbf16> to vector<16x16xbf16>
    %c0_8 = arith.constant 0 : index
    %c0_9 = arith.constant 0 : index
    %c0_10 = arith.constant 0 : index
    %13 = vector.load %arg4[%c0_8, %c0_9, %c0_10] : memref<5x16x32xbf16, #tpu.memory_space<vmem>>, vector<1x16x32xbf16>
    %14 = vector.shape_cast %13 : vector<1x16x32xbf16> to vector<16x32xbf16>
    %cst_11 = arith.constant dense<0.000000e+00> : vector<16x32xf32>
    %15 = tpu.matmul %12, %14, %cst_11 {dimension_numbers = #tpu.dot_dimension_numbers<[1], [0], [0], [1], [0, 0, 1, 1], [], []>} : vector<16x16xbf16>, vector<16x32xbf16>, vector<16x32xf32> -> vector<16x32xf32>
    %16 = arith.addf %11, %15 : vector<16x32xf32>
    %17 = vector.extract_strided_slice %10 {offsets = [1, 0], sizes = [16, 16], strides = [1, 1]} : vector<20x16xbf16> to vector<16x16xbf16>
    %c1 = arith.constant 1 : index
    %c0_12 = arith.constant 0 : index
    %c0_13 = arith.constant 0 : index
    %18 = vector.load %arg4[%c1, %c0_12, %c0_13] : memref<5x16x32xbf16, #tpu.memory_space<vmem>>, vector<1x16x32xbf16>
    %19 = vector.shape_cast %18 : vector<1x16x32xbf16> to vector<16x32xbf16>
    %cst_14 = arith.constant dense<0.000000e+00> : vector<16x32xf32>
    %20 = tpu.matmul %17, %19, %cst_14 {dimension_numbers = #tpu.dot_dimension_numbers<[1], [0], [0], [1], [0, 0, 1, 1], [], []>} : vector<16x16xbf16>, vector<16x32xbf16>, vector<16x32xf32> -> vector<16x32xf32>
    %21 = arith.addf %16, %20 : vector<16x32xf32>
    %22 = vector.extract_strided_slice %10 {offsets = [2, 0], sizes = [16, 16], strides = [1, 1]} : vector<20x16xbf16> to vector<16x16xbf16>
    %c2 = arith.constant 2 : index
    %c0_15 = arith.constant 0 : index
    %c0_16 = arith.constant 0 : index
    %23 = vector.load %arg4[%c2, %c0_15, %c0_16] : memref<5x16x32xbf16, #tpu.memory_space<vmem>>, vector<1x16x32xbf16>
    %24 = vector.shape_cast %23 : vector<1x16x32xbf16> to vector<16x32xbf16>
    %cst_17 = arith.constant dense<0.000000e+00> : vector<16x32xf32>
    %25 = tpu.matmul %22, %24, %cst_17 {dimension_numbers = #tpu.dot_dimension_numbers<[1], [0], [0], [1], [0, 0, 1, 1], [], []>} : vector<16x16xbf16>, vector<16x32xbf16>, vector<16x32xf32> -> vector<16x32xf32>
    %26 = arith.addf %21, %25 : vector<16x32xf32>
    %27 = vector.extract_strided_slice %10 {offsets = [3, 0], sizes = [16, 16], strides = [1, 1]} : vector<20x16xbf16> to vector<16x16xbf16>
    %c3 = arith.constant 3 : index
    %c0_18 = arith.constant 0 : index
    %c0_19 = arith.constant 0 : index
    %28 = vector.load %arg4[%c3, %c0_18, %c0_19] : memref<5x16x32xbf16, #tpu.memory_space<vmem>>, vector<1x16x32xbf16>
    %29 = vector.shape_cast %28 : vector<1x16x32xbf16> to vector<16x32xbf16>
    %cst_20 = arith.constant dense<0.000000e+00> : vector<16x32xf32>
    %30 = tpu.matmul %27, %29, %cst_20 {dimension_numbers = #tpu.dot_dimension_numbers<[1], [0], [0], [1], [0, 0, 1, 1], [], []>} : vector<16x16xbf16>, vector<16x32xbf16>, vector<16x32xf32> -> vector<16x32xf32>
    %31 = arith.addf %26, %30 : vector<16x32xf32>
    %32 = vector.extract_strided_slice %10 {offsets = [4, 0], sizes = [16, 16], strides = [1, 1]} : vector<20x16xbf16> to vector<16x16xbf16>
    %c4 = arith.constant 4 : index
    %c0_21 = arith.constant 0 : index
    %c0_22 = arith.constant 0 : index
    %33 = vector.load %arg4[%c4, %c0_21, %c0_22] : memref<5x16x32xbf16, #tpu.memory_space<vmem>>, vector<1x16x32xbf16>
    %34 = vector.shape_cast %33 : vector<1x16x32xbf16> to vector<16x32xbf16>
    %cst_23 = arith.constant dense<0.000000e+00> : vector<16x32xf32>
    %35 = tpu.matmul %32, %34, %cst_23 {dimension_numbers = #tpu.dot_dimension_numbers<[1], [0], [0], [1], [0, 0, 1, 1], [], []>} : vector<16x16xbf16>, vector<16x32xbf16>, vector<16x32xf32> -> vector<16x32xf32>
    %36 = arith.addf %31, %35 : vector<16x32xf32>
    %c0_24 = arith.constant 0 : index
    %c0_25 = arith.constant 0 : index
    %37 = vector.load %arg5[%c0_24, %c0_25] : memref<1x32xf32, #tpu.memory_space<vmem>>, vector<1x32xf32>
    %38 = vector.broadcast %37 : vector<1x32xf32> to vector<16x32xf32>
    %39 = arith.addf %36, %38 : vector<16x32xf32>
    %cst_26 = arith.constant 0.000000e+00 : f32
    %40 = vector.broadcast %cst_26 : f32 to vector<16x32xf32>
    %41 = arith.maximumf %39, %40 : vector<16x32xf32>
    %cst_27 = arith.constant 0.000000e+00 : f32
    %42 = vector.broadcast %cst_27 : f32 to vector<2x32xf32>
    %43 = tpu.concatenate %42, %41, %42 in 0 : vector<2x32xf32>, vector<16x32xf32>, vector<2x32xf32> -> vector<20x32xf32>
    %44 = arith.truncf %43 : vector<20x32xf32> to vector<20x32xbf16>
    %cst_28 = arith.constant 0.000000e+00 : f32
    %45 = vector.broadcast %cst_28 : f32 to vector<16x32xf32>
    %46 = vector.extract_strided_slice %44 {offsets = [0, 0], sizes = [16, 32], strides = [1, 1]} : vector<20x32xbf16> to vector<16x32xbf16>
    %c0_29 = arith.constant 0 : index
    %c0_30 = arith.constant 0 : index
    %c0_31 = arith.constant 0 : index
    %47 = vector.load %arg6[%c0_29, %c0_30, %c0_31] : memref<5x32x32xbf16, #tpu.memory_space<vmem>>, vector<1x32x32xbf16>
    %48 = vector.shape_cast %47 : vector<1x32x32xbf16> to vector<32x32xbf16>
    %cst_32 = arith.constant dense<0.000000e+00> : vector<16x32xf32>
    %49 = tpu.matmul %46, %48, %cst_32 {dimension_numbers = #tpu.dot_dimension_numbers<[1], [0], [0], [1], [0, 0, 1, 1], [], []>} : vector<16x32xbf16>, vector<32x32xbf16>, vector<16x32xf32> -> vector<16x32xf32>
    %50 = arith.addf %45, %49 : vector<16x32xf32>
    %51 = vector.extract_strided_slice %44 {offsets = [1, 0], sizes = [16, 32], strides = [1, 1]} : vector<20x32xbf16> to vector<16x32xbf16>
    %c1_33 = arith.constant 1 : index
    %c0_34 = arith.constant 0 : index
    %c0_35 = arith.constant 0 : index
    %52 = vector.load %arg6[%c1_33, %c0_34, %c0_35] : memref<5x32x32xbf16, #tpu.memory_space<vmem>>, vector<1x32x32xbf16>
    %53 = vector.shape_cast %52 : vector<1x32x32xbf16> to vector<32x32xbf16>
    %cst_36 = arith.constant dense<0.000000e+00> : vector<16x32xf32>
    %54 = tpu.matmul %51, %53, %cst_36 {dimension_numbers = #tpu.dot_dimension_numbers<[1], [0], [0], [1], [0, 0, 1, 1], [], []>} : vector<16x32xbf16>, vector<32x32xbf16>, vector<16x32xf32> -> vector<16x32xf32>
    %55 = arith.addf %50, %54 : vector<16x32xf32>
    %56 = vector.extract_strided_slice %44 {offsets = [2, 0], sizes = [16, 32], strides = [1, 1]} : vector<20x32xbf16> to vector<16x32xbf16>
    %c2_37 = arith.constant 2 : index
    %c0_38 = arith.constant 0 : index
    %c0_39 = arith.constant 0 : index
    %57 = vector.load %arg6[%c2_37, %c0_38, %c0_39] : memref<5x32x32xbf16, #tpu.memory_space<vmem>>, vector<1x32x32xbf16>
    %58 = vector.shape_cast %57 : vector<1x32x32xbf16> to vector<32x32xbf16>
    %cst_40 = arith.constant dense<0.000000e+00> : vector<16x32xf32>
    %59 = tpu.matmul %56, %58, %cst_40 {dimension_numbers = #tpu.dot_dimension_numbers<[1], [0], [0], [1], [0, 0, 1, 1], [], []>} : vector<16x32xbf16>, vector<32x32xbf16>, vector<16x32xf32> -> vector<16x32xf32>
    %60 = arith.addf %55, %59 : vector<16x32xf32>
    %61 = vector.extract_strided_slice %44 {offsets = [3, 0], sizes = [16, 32], strides = [1, 1]} : vector<20x32xbf16> to vector<16x32xbf16>
    %c3_41 = arith.constant 3 : index
    %c0_42 = arith.constant 0 : index
    %c0_43 = arith.constant 0 : index
    %62 = vector.load %arg6[%c3_41, %c0_42, %c0_43] : memref<5x32x32xbf16, #tpu.memory_space<vmem>>, vector<1x32x32xbf16>
    %63 = vector.shape_cast %62 : vector<1x32x32xbf16> to vector<32x32xbf16>
    %cst_44 = arith.constant dense<0.000000e+00> : vector<16x32xf32>
    %64 = tpu.matmul %61, %63, %cst_44 {dimension_numbers = #tpu.dot_dimension_numbers<[1], [0], [0], [1], [0, 0, 1, 1], [], []>} : vector<16x32xbf16>, vector<32x32xbf16>, vector<16x32xf32> -> vector<16x32xf32>
    %65 = arith.addf %60, %64 : vector<16x32xf32>
    %66 = vector.extract_strided_slice %44 {offsets = [4, 0], sizes = [16, 32], strides = [1, 1]} : vector<20x32xbf16> to vector<16x32xbf16>
    %c4_45 = arith.constant 4 : index
    %c0_46 = arith.constant 0 : index
    %c0_47 = arith.constant 0 : index
    %67 = vector.load %arg6[%c4_45, %c0_46, %c0_47] : memref<5x32x32xbf16, #tpu.memory_space<vmem>>, vector<1x32x32xbf16>
    %68 = vector.shape_cast %67 : vector<1x32x32xbf16> to vector<32x32xbf16>
    %cst_48 = arith.constant dense<0.000000e+00> : vector<16x32xf32>
    %69 = tpu.matmul %66, %68, %cst_48 {dimension_numbers = #tpu.dot_dimension_numbers<[1], [0], [0], [1], [0, 0, 1, 1], [], []>} : vector<16x32xbf16>, vector<32x32xbf16>, vector<16x32xf32> -> vector<16x32xf32>
    %70 = arith.addf %65, %69 : vector<16x32xf32>
    %c0_49 = arith.constant 0 : index
    %c0_50 = arith.constant 0 : index
    %71 = vector.load %arg7[%c0_49, %c0_50] : memref<1x32xf32, #tpu.memory_space<vmem>>, vector<1x32xf32>
    %72 = vector.broadcast %71 : vector<1x32xf32> to vector<16x32xf32>
    %73 = arith.addf %70, %72 : vector<16x32xf32>
    %cst_51 = arith.constant 0.000000e+00 : f32
    %74 = vector.broadcast %cst_51 : f32 to vector<16x32xf32>
    %75 = arith.maximumf %73, %74 : vector<16x32xf32>
    %76 = arith.addf %75, %7 : vector<16x32xf32>
    %cst_52 = arith.constant 0.000000e+00 : f32
    %77 = vector.broadcast %cst_52 : f32 to vector<16x32xf32>
    %78 = arith.maximumf %76, %77 : vector<16x32xf32>
    %79 = arith.truncf %78 : vector<16x32xf32> to vector<16x32xbf16>
    %c0_53 = arith.constant 0 : index
    %c0_54 = arith.constant 0 : index
    %80 = vector.load %arg8[%c0_53, %c0_54] : memref<32x32xbf16, #tpu.memory_space<vmem>>, vector<32x32xbf16>
    %cst_55 = arith.constant dense<0.000000e+00> : vector<16x32xf32>
    %81 = tpu.matmul %79, %80, %cst_55 {dimension_numbers = #tpu.dot_dimension_numbers<[1], [0], [0], [1], [0, 0, 1, 1], [], []>} : vector<16x32xbf16>, vector<32x32xbf16>, vector<16x32xf32> -> vector<16x32xf32>
    %c0_56 = arith.constant 0 : index
    %c0_57 = arith.constant 0 : index
    %82 = vector.load %arg9[%c0_56, %c0_57] : memref<1x32xf32, #tpu.memory_space<vmem>>, vector<1x32xf32>
    %83 = vector.broadcast %82 : vector<1x32xf32> to vector<16x32xf32>
    %84 = arith.addf %81, %83 : vector<16x32xf32>
    %cst_58 = arith.constant 0.000000e+00 : f32
    %85 = vector.broadcast %cst_58 : f32 to vector<4x32xf32>
    %86 = tpu.concatenate %85, %78, %85 in 0 : vector<4x32xf32>, vector<16x32xf32>, vector<4x32xf32> -> vector<24x32xf32>
    %87 = arith.truncf %86 : vector<24x32xf32> to vector<24x32xbf16>
    %cst_59 = arith.constant 0.000000e+00 : f32
    %88 = vector.broadcast %cst_59 : f32 to vector<16x32xf32>
    %89 = vector.extract_strided_slice %87 {offsets = [0, 0], sizes = [16, 32], strides = [1, 1]} : vector<24x32xbf16> to vector<16x32xbf16>
    %c0_60 = arith.constant 0 : index
    %c0_61 = arith.constant 0 : index
    %c0_62 = arith.constant 0 : index
    %90 = vector.load %arg10[%c0_60, %c0_61, %c0_62] : memref<5x32x32xbf16, #tpu.memory_space<vmem>>, vector<1x32x32xbf16>
    %91 = vector.shape_cast %90 : vector<1x32x32xbf16> to vector<32x32xbf16>
    %cst_63 = arith.constant dense<0.000000e+00> : vector<16x32xf32>
    %92 = tpu.matmul %89, %91, %cst_63 {dimension_numbers = #tpu.dot_dimension_numbers<[1], [0], [0], [1], [0, 0, 1, 1], [], []>} : vector<16x32xbf16>, vector<32x32xbf16>, vector<16x32xf32> -> vector<16x32xf32>
    %93 = arith.addf %88, %92 : vector<16x32xf32>
    %94 = vector.extract_strided_slice %87 {offsets = [2, 0], sizes = [16, 32], strides = [1, 1]} : vector<24x32xbf16> to vector<16x32xbf16>
    %c1_64 = arith.constant 1 : index
    %c0_65 = arith.constant 0 : index
    %c0_66 = arith.constant 0 : index
    %95 = vector.load %arg10[%c1_64, %c0_65, %c0_66] : memref<5x32x32xbf16, #tpu.memory_space<vmem>>, vector<1x32x32xbf16>
    %96 = vector.shape_cast %95 : vector<1x32x32xbf16> to vector<32x32xbf16>
    %cst_67 = arith.constant dense<0.000000e+00> : vector<16x32xf32>
    %97 = tpu.matmul %94, %96, %cst_67 {dimension_numbers = #tpu.dot_dimension_numbers<[1], [0], [0], [1], [0, 0, 1, 1], [], []>} : vector<16x32xbf16>, vector<32x32xbf16>, vector<16x32xf32> -> vector<16x32xf32>
    %98 = arith.addf %93, %97 : vector<16x32xf32>
    %99 = vector.extract_strided_slice %87 {offsets = [4, 0], sizes = [16, 32], strides = [1, 1]} : vector<24x32xbf16> to vector<16x32xbf16>
    %c2_68 = arith.constant 2 : index
    %c0_69 = arith.constant 0 : index
    %c0_70 = arith.constant 0 : index
    %100 = vector.load %arg10[%c2_68, %c0_69, %c0_70] : memref<5x32x32xbf16, #tpu.memory_space<vmem>>, vector<1x32x32xbf16>
    %101 = vector.shape_cast %100 : vector<1x32x32xbf16> to vector<32x32xbf16>
    %cst_71 = arith.constant dense<0.000000e+00> : vector<16x32xf32>
    %102 = tpu.matmul %99, %101, %cst_71 {dimension_numbers = #tpu.dot_dimension_numbers<[1], [0], [0], [1], [0, 0, 1, 1], [], []>} : vector<16x32xbf16>, vector<32x32xbf16>, vector<16x32xf32> -> vector<16x32xf32>
    %103 = arith.addf %98, %102 : vector<16x32xf32>
    %104 = vector.extract_strided_slice %87 {offsets = [6, 0], sizes = [16, 32], strides = [1, 1]} : vector<24x32xbf16> to vector<16x32xbf16>
    %c3_72 = arith.constant 3 : index
    %c0_73 = arith.constant 0 : index
    %c0_74 = arith.constant 0 : index
    %105 = vector.load %arg10[%c3_72, %c0_73, %c0_74] : memref<5x32x32xbf16, #tpu.memory_space<vmem>>, vector<1x32x32xbf16>
    %106 = vector.shape_cast %105 : vector<1x32x32xbf16> to vector<32x32xbf16>
    %cst_75 = arith.constant dense<0.000000e+00> : vector<16x32xf32>
    %107 = tpu.matmul %104, %106, %cst_75 {dimension_numbers = #tpu.dot_dimension_numbers<[1], [0], [0], [1], [0, 0, 1, 1], [], []>} : vector<16x32xbf16>, vector<32x32xbf16>, vector<16x32xf32> -> vector<16x32xf32>
    %108 = arith.addf %103, %107 : vector<16x32xf32>
    %109 = vector.extract_strided_slice %87 {offsets = [8, 0], sizes = [16, 32], strides = [1, 1]} : vector<24x32xbf16> to vector<16x32xbf16>
    %c4_76 = arith.constant 4 : index
    %c0_77 = arith.constant 0 : index
    %c0_78 = arith.constant 0 : index
    %110 = vector.load %arg10[%c4_76, %c0_77, %c0_78] : memref<5x32x32xbf16, #tpu.memory_space<vmem>>, vector<1x32x32xbf16>
    %111 = vector.shape_cast %110 : vector<1x32x32xbf16> to vector<32x32xbf16>
    %cst_79 = arith.constant dense<0.000000e+00> : vector<16x32xf32>
    %112 = tpu.matmul %109, %111, %cst_79 {dimension_numbers = #tpu.dot_dimension_numbers<[1], [0], [0], [1], [0, 0, 1, 1], [], []>} : vector<16x32xbf16>, vector<32x32xbf16>, vector<16x32xf32> -> vector<16x32xf32>
    %113 = arith.addf %108, %112 : vector<16x32xf32>
    %c0_80 = arith.constant 0 : index
    %c0_81 = arith.constant 0 : index
    %114 = vector.load %arg11[%c0_80, %c0_81] : memref<1x32xf32, #tpu.memory_space<vmem>>, vector<1x32xf32>
    %115 = vector.broadcast %114 : vector<1x32xf32> to vector<16x32xf32>
    %116 = arith.addf %113, %115 : vector<16x32xf32>
    %cst_82 = arith.constant 0.000000e+00 : f32
    %117 = vector.broadcast %cst_82 : f32 to vector<16x32xf32>
    %118 = arith.maximumf %116, %117 : vector<16x32xf32>
    %cst_83 = arith.constant 0.000000e+00 : f32
    %119 = vector.broadcast %cst_83 : f32 to vector<4x32xf32>
    %120 = tpu.concatenate %119, %118, %119 in 0 : vector<4x32xf32>, vector<16x32xf32>, vector<4x32xf32> -> vector<24x32xf32>
    %121 = arith.truncf %120 : vector<24x32xf32> to vector<24x32xbf16>
    %cst_84 = arith.constant 0.000000e+00 : f32
    %122 = vector.broadcast %cst_84 : f32 to vector<16x32xf32>
    %123 = vector.extract_strided_slice %121 {offsets = [0, 0], sizes = [16, 32], strides = [1, 1]} : vector<24x32xbf16> to vector<16x32xbf16>
    %c0_85 = arith.constant 0 : index
    %c0_86 = arith.constant 0 : index
    %c0_87 = arith.constant 0 : index
    %124 = vector.load %arg12[%c0_85, %c0_86, %c0_87] : memref<5x32x32xbf16, #tpu.memory_space<vmem>>, vector<1x32x32xbf16>
    %125 = vector.shape_cast %124 : vector<1x32x32xbf16> to vector<32x32xbf16>
    %cst_88 = arith.constant dense<0.000000e+00> : vector<16x32xf32>
    %126 = tpu.matmul %123, %125, %cst_88 {dimension_numbers = #tpu.dot_dimension_numbers<[1], [0], [0], [1], [0, 0, 1, 1], [], []>} : vector<16x32xbf16>, vector<32x32xbf16>, vector<16x32xf32> -> vector<16x32xf32>
    %127 = arith.addf %122, %126 : vector<16x32xf32>
    %128 = vector.extract_strided_slice %121 {offsets = [2, 0], sizes = [16, 32], strides = [1, 1]} : vector<24x32xbf16> to vector<16x32xbf16>
    %c1_89 = arith.constant 1 : index
    %c0_90 = arith.constant 0 : index
    %c0_91 = arith.constant 0 : index
    %129 = vector.load %arg12[%c1_89, %c0_90, %c0_91] : memref<5x32x32xbf16, #tpu.memory_space<vmem>>, vector<1x32x32xbf16>
    %130 = vector.shape_cast %129 : vector<1x32x32xbf16> to vector<32x32xbf16>
    %cst_92 = arith.constant dense<0.000000e+00> : vector<16x32xf32>
    %131 = tpu.matmul %128, %130, %cst_92 {dimension_numbers = #tpu.dot_dimension_numbers<[1], [0], [0], [1], [0, 0, 1, 1], [], []>} : vector<16x32xbf16>, vector<32x32xbf16>, vector<16x32xf32> -> vector<16x32xf32>
    %132 = arith.addf %127, %131 : vector<16x32xf32>
    %133 = vector.extract_strided_slice %121 {offsets = [4, 0], sizes = [16, 32], strides = [1, 1]} : vector<24x32xbf16> to vector<16x32xbf16>
    %c2_93 = arith.constant 2 : index
    %c0_94 = arith.constant 0 : index
    %c0_95 = arith.constant 0 : index
    %134 = vector.load %arg12[%c2_93, %c0_94, %c0_95] : memref<5x32x32xbf16, #tpu.memory_space<vmem>>, vector<1x32x32xbf16>
    %135 = vector.shape_cast %134 : vector<1x32x32xbf16> to vector<32x32xbf16>
    %cst_96 = arith.constant dense<0.000000e+00> : vector<16x32xf32>
    %136 = tpu.matmul %133, %135, %cst_96 {dimension_numbers = #tpu.dot_dimension_numbers<[1], [0], [0], [1], [0, 0, 1, 1], [], []>} : vector<16x32xbf16>, vector<32x32xbf16>, vector<16x32xf32> -> vector<16x32xf32>
    %137 = arith.addf %132, %136 : vector<16x32xf32>
    %138 = vector.extract_strided_slice %121 {offsets = [6, 0], sizes = [16, 32], strides = [1, 1]} : vector<24x32xbf16> to vector<16x32xbf16>
    %c3_97 = arith.constant 3 : index
    %c0_98 = arith.constant 0 : index
    %c0_99 = arith.constant 0 : index
    %139 = vector.load %arg12[%c3_97, %c0_98, %c0_99] : memref<5x32x32xbf16, #tpu.memory_space<vmem>>, vector<1x32x32xbf16>
    %140 = vector.shape_cast %139 : vector<1x32x32xbf16> to vector<32x32xbf16>
    %cst_100 = arith.constant dense<0.000000e+00> : vector<16x32xf32>
    %141 = tpu.matmul %138, %140, %cst_100 {dimension_numbers = #tpu.dot_dimension_numbers<[1], [0], [0], [1], [0, 0, 1, 1], [], []>} : vector<16x32xbf16>, vector<32x32xbf16>, vector<16x32xf32> -> vector<16x32xf32>
    %142 = arith.addf %137, %141 : vector<16x32xf32>
    %143 = vector.extract_strided_slice %121 {offsets = [8, 0], sizes = [16, 32], strides = [1, 1]} : vector<24x32xbf16> to vector<16x32xbf16>
    %c4_101 = arith.constant 4 : index
    %c0_102 = arith.constant 0 : index
    %c0_103 = arith.constant 0 : index
    %144 = vector.load %arg12[%c4_101, %c0_102, %c0_103] : memref<5x32x32xbf16, #tpu.memory_space<vmem>>, vector<1x32x32xbf16>
    %145 = vector.shape_cast %144 : vector<1x32x32xbf16> to vector<32x32xbf16>
    %cst_104 = arith.constant dense<0.000000e+00> : vector<16x32xf32>
    %146 = tpu.matmul %143, %145, %cst_104 {dimension_numbers = #tpu.dot_dimension_numbers<[1], [0], [0], [1], [0, 0, 1, 1], [], []>} : vector<16x32xbf16>, vector<32x32xbf16>, vector<16x32xf32> -> vector<16x32xf32>
    %147 = arith.addf %142, %146 : vector<16x32xf32>
    %c0_105 = arith.constant 0 : index
    %c0_106 = arith.constant 0 : index
    %148 = vector.load %arg13[%c0_105, %c0_106] : memref<1x32xf32, #tpu.memory_space<vmem>>, vector<1x32xf32>
    %149 = vector.broadcast %148 : vector<1x32xf32> to vector<16x32xf32>
    %150 = arith.addf %147, %149 : vector<16x32xf32>
    %cst_107 = arith.constant 0.000000e+00 : f32
    %151 = vector.broadcast %cst_107 : f32 to vector<16x32xf32>
    %152 = arith.maximumf %150, %151 : vector<16x32xf32>
    %153 = arith.addf %152, %84 : vector<16x32xf32>
    %cst_108 = arith.constant 0.000000e+00 : f32
    %154 = vector.broadcast %cst_108 : f32 to vector<16x32xf32>
    %155 = arith.maximumf %153, %154 : vector<16x32xf32>
    %c0_109 = arith.constant 0 : index
    %c0_110 = arith.constant 0 : index
    %c0_111 = arith.constant 0 : index
    %156 = vector.load %arg14[%c0_109, %c0_110, %c0_111] : memref<1x16x32xf32, #tpu.memory_space<vmem>>, vector<1x16x32xf32>
    %157 = vector.shape_cast %156 : vector<1x16x32xf32> to vector<16x32xf32>
    %158 = vector.shape_cast %155 : vector<16x32xf32> to vector<1x16x32xf32>
    tpu.vector_store %arg14[%c0_109, %c0_110, %c0_111], %158 {strides = array<i32>} : memref<1x16x32xf32, #tpu.memory_space<vmem>>, vector<1x16x32xf32>,
    return
  }
  func.func @transform_0(%arg0: i32) -> (i32, i32, i32) {
    %c0_i32 = arith.constant 0 : i32
    %c0_i32_0 = arith.constant 0 : i32
    %c0_i32_1 = arith.constant 0 : i32
    return %arg0, %c0_i32, %c0_i32_0 : i32, i32, i32
  }
  func.func @transform_1(%arg0: i32) -> (i32, i32) {
    %c0_i32 = arith.constant 0 : i32
    %c0_i32_0 = arith.constant 0 : i32
    %c0_i32_1 = arith.constant 0 : i32
    return %c0_i32, %c0_i32_0 : i32, i32
  }
  func.func @transform_2(%arg0: i32) -> (i32, i32) {
    %c0_i32 = arith.constant 0 : i32
    %c0_i32_0 = arith.constant 0 : i32
    %c0_i32_1 = arith.constant 0 : i32
    return %c0_i32, %c0_i32_0 : i32, i32
  }
  func.func @transform_3(%arg0: i32) -> (i32, i32, i32) {
    %c0_i32 = arith.constant 0 : i32
    %c0_i32_0 = arith.constant 0 : i32
    %c0_i32_1 = arith.constant 0 : i32
    %c0_i32_2 = arith.constant 0 : i32
    return %c0_i32, %c0_i32_0, %c0_i32_1 : i32, i32, i32
  }
  func.func @transform_4(%arg0: i32) -> (i32, i32) {
    %c0_i32 = arith.constant 0 : i32
    %c0_i32_0 = arith.constant 0 : i32
    %c0_i32_1 = arith.constant 0 : i32
    return %c0_i32, %c0_i32_0 : i32, i32
  }
  func.func @transform_5(%arg0: i32) -> (i32, i32, i32) {
    %c0_i32 = arith.constant 0 : i32
    %c0_i32_0 = arith.constant 0 : i32
    %c0_i32_1 = arith.constant 0 : i32
    %c0_i32_2 = arith.constant 0 : i32
    return %c0_i32, %c0_i32_0, %c0_i32_1 : i32, i32, i32
  }
  func.func @transform_6(%arg0: i32) -> (i32, i32) {
    %c0_i32 = arith.constant 0 : i32
    %c0_i32_0 = arith.constant 0 : i32
    %c0_i32_1 = arith.constant 0 : i32
    return %c0_i32, %c0_i32_0 : i32, i32
  }
  func.func @transform_7(%arg0: i32) -> (i32, i32) {
    %c0_i32 = arith.constant 0 : i32
    %c0_i32_0 = arith.constant 0 : i32
    %c0_i32_1 = arith.constant 0 : i32
    return %c0_i32, %c0_i32_0 : i32, i32
  }
  func.func @transform_8(%arg0: i32) -> (i32, i32) {
    %c0_i32 = arith.constant 0 : i32
    %c0_i32_0 = arith.constant 0 : i32
    %c0_i32_1 = arith.constant 0 : i32
    return %c0_i32, %c0_i32_0 : i32, i32
  }
  func.func @transform_9(%arg0: i32) -> (i32, i32, i32) {
    %c0_i32 = arith.constant 0 : i32
    %c0_i32_0 = arith.constant 0 : i32
    %c0_i32_1 = arith.constant 0 : i32
    %c0_i32_2 = arith.constant 0 : i32
    return %c0_i32, %c0_i32_0, %c0_i32_1 : i32, i32, i32
  }
  func.func @transform_10(%arg0: i32) -> (i32, i32) {
    %c0_i32 = arith.constant 0 : i32
    %c0_i32_0 = arith.constant 0 : i32
    %c0_i32_1 = arith.constant 0 : i32
    return %c0_i32, %c0_i32_0 : i32, i32
  }
  func.func @transform_11(%arg0: i32) -> (i32, i32, i32) {
    %c0_i32 = arith.constant 0 : i32
    %c0_i32_0 = arith.constant 0 : i32
    %c0_i32_1 = arith.constant 0 : i32
    %c0_i32_2 = arith.constant 0 : i32
    return %c0_i32, %c0_i32_0, %c0_i32_1 : i32, i32, i32
  }
  func.func @transform_12(%arg0: i32) -> (i32, i32) {
    %c0_i32 = arith.constant 0 : i32
    %c0_i32_0 = arith.constant 0 : i32
    %c0_i32_1 = arith.constant 0 : i32
    return %c0_i32, %c0_i32_0 : i32, i32
  }
  func.func @transform_13(%arg0: i32) -> (i32, i32, i32) {
    %c0_i32 = arith.constant 0 : i32
    %c0_i32_0 = arith.constant 0 : i32
    %c0_i32_1 = arith.constant 0 : i32
    return %arg0, %c0_i32, %c0_i32_0 : i32, i32, i32
  }
}

</mosaic_0001>

<bundles_post_ra>
// kernel: tpu_custom_call.1
= control target key start
LH: loop header
LB: loop body
LE: loop exit
PB: predicated region body
PF: predicated region fallthrough
CT: control target
= control target key end

     0   :  { %s3478_s0 = inlined_call_operand.hbm [shape: f32[2,16,16], index: 0, kind: input, shape index: {}]   ;;  %s3479_s1 = inlined_call_operand.hbm [shape: bf16[16,32], index: 1, kind: input, shape index: {}]   ;;  %s3480_s2 = inlined_call_operand.vmem [shape: f32[1,32], index: 2, kind: input, shape index: {}]   ;;  %s3481_s3 = inlined_call_operand.hbm [shape: bf16[5,16,32], index: 3, kind: input, shape index: {}]   ;;  %s3482_s4 = inlined_call_operand.vmem [shape: f32[1,32], index: 4, kind: input, shape index: {}]   ;;  %s3483_s5 = inlined_call_operand.hbm [shape: bf16[5,32,32], index: 5, kind: input, shape index: {}]   ;;  %s3484_s6 = inlined_call_operand.vmem [shape: f32[1,32], index: 6, kind: input, shape index: {}]   ;;  %s3485_s7 = inlined_call_operand.vmem [shape: bf16[32,32], index: 7, kind: input, shape index: {}]   ;;  %s3486_s8 = inlined_call_operand.vmem [shape: f32[1,32], index: 8, kind: input, shape index: {}]   ;;  %s3487_s9 = inlined_call_operand.hbm [shape: bf16[5,32,32], index: 9, kind: input, shape index: {}]   ;;  %s3488_s10 = inlined_call_operand.vmem [shape: f32[1,32], index: 10, kind: input, shape index: {}]   ;;  %s3489_s11 = inlined_call_operand.hbm [shape: bf16[5,32,32], index: 11, kind: input, shape index: {}]   ;;  %s3490_s12 = inlined_call_operand.vmem [shape: f32[1,32], index: 12, kind: input, shape index: {}]   ;;  %s3491_s13 = inlined_call_operand.hbm [shape: f32[2,16,32], index: 13, kind: output, shape index: {}]  }
   0x1   :  { %3496 = sst [smem:[#allocation19_spill]] %s3479_s1 }
   0x2   :  { %3497 = sst [smem:[#allocation20_spill]] %s3480_s2 }
   0x3   :  { %3498 = sst [smem:[#allocation21_spill]] %s3486_s8 }
   0x4   :  { %3499 = sst [smem:[#allocation22_spill]] %s3488_s10 }
   0x5   :  { %3500 = sst [smem:[#allocation23_spill]] %s3490_s12 }
   0x6   :  { %3501 = sst [smem:[#allocation24_spill]] %s3491_s13 }
   0x7   :  { %18 = vsyncpa [#allocation3], 0 }
   0x8   :  { %20 = vsyncpa [#allocation3 + $0x1], 0 }
   0x9   :  { %21 = vsyncpa [#allocation6], 0 }
   0xa   :  { %22 = vsyncpa [#allocation9], 0 }
   0xb   :  { %23 = vsyncpa [#allocation12], 0 }
   0xc   :  { %24 = vsyncpa [#allocation4], 0 }
   0xd   :  { %26 = vsyncpa [#allocation4 + $0x1], 0  ;;  %s2988_s25 = smov 0   ;;  %s2990_s26 = smov 0  }
   0xe   :  { %s2992_s27 = smov 0   ;;  %s2994_s28 = smov 0  }
   0xf LB: > { %s2903_s29 = smov [#allocation5]   ;;  %s3009_s14 = sadd.s32 4294967295, %s2901_s28   ;;  %s2901_s28 = sphi %s2994_s28, %s3529_s28   ;;  %s2897_s27 = sphi %s2992_s27, %s3528_s27   ;;  %s2893_s26 = sphi %s2990_s26, %s3527_s26   ;;  %s2889_s25 = sphi %s2988_s25, %s3526_s25  }
  0x10   : > { %s353_s30 = sshll.u32 %s2903_s29, 4  ;;  %p2195_p0 = scmp.ge.s32.totalorder %s2901_s28, 1  ;;  %s3014_s30 = int_to_ptr.vmem [resolvable:$true] %s353_s30 }
  0x11   : > { %p3493_p1 = scmp.eq.s32.totalorder %s3009_s14, 0  ;;  %p341_p2 = scmp.lt.s32.totalorder %s2901_s28, 3 }
  0x12   : > { %s2904_s16 = smov [#allocation8]   ;;  %s2905_s19 = smov [#allocation7]  }
  0x13   : > { %p3016_p3 = pnand %p2195_p0, %p341_p2  ;;  %s385_s17 = sshll.u32 %s2904_s16, 4  ;;  %s3029_s17 = int_to_ptr.vmem [resolvable:$true] %s385_s17 }
  0x14   : > { %s369_s20 = sshll.u32 %s2905_s19, 4  ;;  %s3504_s1 = sld [smem:[#allocation19_spill]]  ;;  %s3031_s20 = int_to_ptr.vmem [resolvable:$true] %s369_s20 }
  0x15   : > { %s3502_s15 = scalar_select %p3016_p3, 1, 0 }
  0x16   : > { %p2534_p5 = pneg %p3016_p3 }
  0x18   : > { %p3025_p6 = pnand %p2534_p5, %p3493_p1 }
  0x1a   : > { %s2653_s23 = scalar_lea.hbm %s3504_s1, 128  ;;  %p3041_p8 = pneg %p3025_p6 }
  0x1b   : > { %p2654_p7 = scmp.ne.s32.totalorder %s3504_s1, %s2653_s23  ;;  %p2660_p11 = scmp.lt.u32.totalorder %s2653_s23, %s3504_s1 }
  0x1d   : > { %p2656_p9 = pnand %p3041_p8, %p2654_p7 }
  0x1f   : > { %p2657_p10 = pneg %p2656_p9 }
  0x21   : > { %p2662_p12 = pnand %p2660_p11, %p2657_p10 }
  0x23   : > { %2665 = shalt.err (!%p2662_p12)
}
  0x24   : > { %s2666_s21 = scalar_lea.vmem %s3014_s30, 128  ;;  %p2674_p5 = scmp.lt.s32.totalorder %s3014_s30, %s3014_s30 }
  0x25   : > { %p2667_p13 = scmp.ne.s32.totalorder %s3014_s30, %s2666_s21  ;;  %p2675_p4 = scmp.lt.s32.totalorder %s2666_s21, %s2666_s21 }
  0x27   : > { %p2669_p0 = pnand %p2667_p13, %p3041_p8  ;;  %p2676_p7 = por %p2675_p4, %p2674_p5 }
  0x29   : > { %p2670_p2 = pneg %p2669_p0 }
  0x2b   : > { %p2677_p9 = pnand %p2676_p7, %p2670_p2 }
  0x2d   : > { %2680 = shalt.err (!%p2677_p9)
}
  0x2e   : > { %s2906_s22 = smov 64   ;;  %s2907_s13 = smov 4  }
  0x2f   : > { %2537 = dma.hbm_to_vmem [thread:$0]  (!%p3025_p6), %s3504_s1, 128, %s3014_s30, [#allocation6], %s2906_s22, %s2906_s22, %s2907_s13  }
  0x30   : > { %s2681_s21 = scalar_lea.hbm %s3483_s5, 1280 }
  0x31   : > { %p2682_p4 = scmp.ne.s32.totalorder %s3483_s5, %s2681_s21  ;;  %p2688_p12 = scmp.lt.u32.totalorder %s2681_s21, %s3483_s5 }
  0x33   : > { %p2684_p10 = pnand %p2682_p4, %p3041_p8 }
  0x35   : > { %p2685_p11 = pneg %p2684_p10 }
  0x37   : > { %p2690_p13 = pnand %p2688_p12, %p2685_p11 }
  0x39   : > { %2693 = shalt.err (!%p2690_p13)
}
  0x3a   : > { %s2694_s30 = scalar_lea.vmem %s3029_s17, 1280  ;;  %p2702_p7 = scmp.lt.s32.totalorder %s3029_s17, %s3029_s17 }
  0x3b   : > { %p2695_p0 = scmp.ne.s32.totalorder %s3029_s17, %s2694_s30  ;;  %p2703_p9 = scmp.lt.s32.totalorder %s2694_s30, %s2694_s30 }
  0x3d   : > { %p2697_p2 = pnand %p2695_p0, %p3041_p8  ;;  %p2704_p4 = por %p2703_p9, %p2702_p7 }
  0x3f   : > { %p2698_p5 = pneg %p2697_p2 }
  0x41   : > { %p2705_p10 = pnand %p2704_p4, %p2698_p5 }
  0x43   : > { %2708 = shalt.err (!%p2705_p10)
}
  0x44   : > { %2543 = dma.hbm_to_vmem [thread:$0]  (!%p3025_p6), %s3483_s5, 1280, %s3029_s17, [#allocation9], %s2906_s22, %s2906_s22, %s2907_s13  }
  0x45   : > { %s2709_s23 = scalar_lea.hbm %s3481_s3, 640 }
  0x46   : > { %p2710_p11 = scmp.ne.s32.totalorder %s3481_s3, %s2709_s23  ;;  %p2716_p0 = scmp.lt.u32.totalorder %s2709_s23, %s3481_s3 }
  0x48   : > { %p2712_p12 = pnand %p2710_p11, %p3041_p8 }
  0x4a   : > { %p2713_p13 = pneg %p2712_p12 }
  0x4c   : > { %p2718_p2 = pnand %p2716_p0, %p2713_p13 }
  0x4e   : > { %2721 = shalt.err (!%p2718_p2)
}
  0x4f   : > { %s2722_s17 = scalar_lea.vmem %s3031_s20, 640  ;;  %p2730_p4 = scmp.lt.s32.totalorder %s3031_s20, %s3031_s20 }
  0x50   : > { %p2723_p5 = scmp.ne.s32.totalorder %s3031_s20, %s2722_s17  ;;  %p2731_p10 = scmp.lt.s32.totalorder %s2722_s17, %s2722_s17 }
  0x52   : > { %p2725_p7 = pnand %p2723_p5, %p3041_p8  ;;  %p2732_p11 = por %p2731_p10, %p2730_p4 }
  0x54   : > { %p2726_p9 = pneg %p2725_p7 }
  0x56   : > { %p2733_p12 = pnand %p2732_p11, %p2726_p9 }
  0x58   : > { %2736 = shalt.err (!%p2733_p12)
}
  0x59   : > { %2540 = dma.hbm_to_vmem [thread:$0]  (!%p3025_p6), %s3481_s3, 640, %s3031_s20, [#allocation6], %s2906_s22, %s2906_s22, %s2907_s13  }
  0x5a   : > { %s2908_s8 = smov [#allocation10]   ;;  %s2909_s12 = smov [#allocation11]  }
  0x5b   : > { %s407_s10 = sshll.u32 %s2908_s8, 4  ;;  %s423_s23 = sshll.u32 %s2909_s12, 4  ;;  %s408_s10 = int_to_ptr.vmem [resolvable:$true] %s407_s10  ;;  %s424_s23 = int_to_ptr.vmem [resolvable:$true] %s423_s23 }
  0x5c   : > { %s2737_s19 = scalar_lea.hbm %s3487_s9, 1280 }
  0x5d   : > { %p2738_p13 = scmp.ne.s32.totalorder %s3487_s9, %s2737_s19  ;;  %p2744_p5 = scmp.lt.u32.totalorder %s2737_s19, %s3487_s9 }
  0x5f   : > { %p2740_p0 = pnand %p2738_p13, %p3041_p8 }
  0x61   : > { %p2741_p2 = pneg %p2740_p0 }
  0x63   : > { %p2746_p7 = pnand %p2744_p5, %p2741_p2 }
  0x65   : > { %2749 = shalt.err (!%p2746_p7)
}
  0x66   : > { %s2750_s20 = scalar_lea.vmem %s408_s10, 1280  ;;  %p2758_p11 = scmp.lt.s32.totalorder %s408_s10, %s408_s10 }
  0x67   : > { %p2751_p9 = scmp.ne.s32.totalorder %s408_s10, %s2750_s20  ;;  %p2759_p12 = scmp.lt.s32.totalorder %s2750_s20, %s2750_s20 }
  0x69   : > { %p2753_p4 = pnand %p2751_p9, %p3041_p8  ;;  %p2760_p1 = por %p2759_p12, %p2758_p11 }
  0x6b   : > { %p2754_p10 = pneg %p2753_p4 }
  0x6d   : > { %p2761_p3 = pnand %p2760_p1, %p2754_p10 }
  0x6f   : > { %2764 = shalt.err (!%p2761_p3)
}
  0x70   : > { %2546 = dma.hbm_to_vmem [thread:$0]  (!%p3025_p6), %s3487_s9, 1280, %s408_s10, [#allocation9], %s2906_s22, %s2906_s22, %s2907_s13  }
  0x71   : > { %s2765_s24 = scalar_lea.hbm %s3489_s11, 1280 }
  0x72   : > { %p2766_p1 = scmp.ne.s32.totalorder %s3489_s11, %s2765_s24  ;;  %p2772_p0 = scmp.lt.u32.totalorder %s2765_s24, %s3489_s11 }
  0x74   : > { %p2768_p3 = pnand %p2766_p1, %p3041_p8 }
  0x76   : > { %p2769_p13 = pneg %p2768_p3 }
  0x78   : > { %p2774_p2 = pnand %p2772_p0, %p2769_p13 }
  0x7a   : > { %2777 = shalt.err (!%p2774_p2)
}
  0x7b   : > { %s2778_s30 = scalar_lea.vmem %s424_s23, 1280  ;;  %p2786_p4 = scmp.lt.s32.totalorder %s424_s23, %s424_s23 }
  0x7c   : > { %p2779_p5 = scmp.ne.s32.totalorder %s424_s23, %s2778_s30  ;;  %p2787_p10 = scmp.lt.s32.totalorder %s2778_s30, %s2778_s30 }
  0x7e   : > { %p2781_p7 = pnand %p2779_p5, %p3041_p8  ;;  %p2788_p11 = por %p2787_p10, %p2786_p4 }
  0x80   : > { %p2782_p9 = pneg %p2781_p7 }
  0x82   : > { %p2789_p12 = pnand %p2788_p11, %p2782_p9 }
  0x84   : > { %2792 = shalt.err (!%p2789_p12)
}
  0x85   : > { %2549 = dma.hbm_to_vmem [thread:$0]  (!%p3025_p6), %s3489_s11, 1280, %s424_s23, [#allocation12], %s2906_s22, %s2906_s22, %s2907_s13  }
  0x86   : > { %s2194_s18 = sadd.s32 4294967294, %s2901_s28   ;;  %s3161_s16 = sadd.s32 1, %s2901_s28  }
  0x87   : > { %s39_s1 = sadd.s32 1, %s2897_s27  ;;  %s36_s2 = ssub.s32 %s2901_s28, %s3161_s16 }
  0x88   : > { %p46_p8 = scmp.ne.s32.totalorder %s2897_s27, %s2893_s26  ;;  %p37_p1 = scmp.eq.s32.totalorder %s36_s2, 0 }
  0x89   : > { %p47_p3 = scmp.eq.s32.totalorder %s2901_s28, 0  ;;  %p52_p13 = scmp.ne.s32.totalorder %s2893_s26, %s2889_s25 }
  0x8a   : > { %p328_p0 = scmp.eq.s32.totalorder %s3009_s14, 1  ;;  %p3506_p5 = scmp.eq.s32.totalorder %s3009_s14, 0 }
  0x8b   : > { %s3173_s8 = scalar_select %p37_p1, %s2897_s27, %s39_s1  }
  0x8c   : > { %p48_p2 = por %p47_p3, %p46_p8  ;;  %p3177_p7 = por %p3506_p5, %p52_p13 }
  0x8d   : > { %p3181_p6 = por %p328_p0, %p46_p8  ;;  %p334_p9 = scmp.eq.s32.totalorder %s2194_s18, 1 }
  0x8e   : > { %p2563_p4 = scmp.lt.s32.totalorder %s2901_s28, 2  ;;  %s440_s13 = sand.u32 1, %s2897_s27  }
  0x8f   : > { %s3508_s22 = scalar_select %p3181_p6, 1, 0 }
  0x90   : > { %p3187_p10 = por %p334_p9, %p52_p13  ;;  %s2202_s24 = sshll.u32 %s440_s13, 4 }
  0x91   : > { %s2284_s29 = sshll.u32 %s2901_s28, 8  ;;  %s444_s30 = scalar_lea.vmem [#allocation2], %s2202_s24 }
  0x92   : > { %s3509_s23 = scalar_select %p3187_p10, 1, 0 }
  0x93   : > { %s3195_s17 = scalar_lea.hbm %s3478_s0, %s2284_s29  ;;  %s451_s10 = sshll.u32 %s444_s30, 4  ;;  %s3201_s10 = int_to_ptr.vmem [resolvable:$true] %s451_s10 }
  0x94   : > { %p3197_p11 = pnand %p2563_p4, %p48_p2  ;;  %s3203_s18 = scalar_lea.sflag [#allocation3], %s440_s13 }
  0x95   : > { %s2793_s1 = scalar_lea.hbm %s3195_s17, 256  ;;  %s2798_s29 = scalar_lea.hbm %s3478_s0, 512 }
  0x96   : > { %p2794_p12 = scmp.ne.s32.totalorder %s3195_s17, %s2793_s1  ;;  %p2795_p8 = pneg %p3197_p11 }
  0x97   : > { %p2799_p13 = scmp.lt.u32.totalorder %s3195_s17, %s3478_s0  ;;  %p2800_p0 = scmp.lt.u32.totalorder %s2798_s29, %s2793_s1 }
  0x98   : > { %p2796_p1 = pnand %p2795_p8, %p2794_p12  ;;  %p2802_p5 = scmp.lt.u32.totalorder %s2793_s1, %s3195_s17 }
  0x99   : > { %p2801_p2 = por %p2800_p0, %p2799_p13 }
  0x9a   : > { %p2797_p3 = pneg %p2796_p1 }
  0x9b   : > { %p2803_p9 = por %p2802_p5, %p2801_p2 }
  0x9d   : > { %p2804_p4 = pnand %p2803_p9, %p2797_p3 }
  0x9f   : > { %2807 = shalt.err (!%p2804_p4)
}
  0xa0   : > { %s2808_s13 = scalar_lea.vmem %s3201_s10, 256  ;;  %s2910_s30 = smov [#allocation2]  }
  0xa1   : > { %p2809_p12 = scmp.ne.s32.totalorder %s3201_s10, %s2808_s13  ;;  %s2813_s2 = sshll.u32 %s2910_s30, 4  ;;  %s2814_s2 = int_to_ptr.vmem [resolvable:$false] %s2813_s2 }
  0xa2   : > { %s2815_s24 = scalar_lea.vmem %s2814_s2, 512  ;;  %p2816_p6 = scmp.lt.s32.totalorder %s3201_s10, %s2814_s2 }
  0xa3   : > { %p2811_p1 = pnand %p2809_p12, %p2795_p8  ;;  %p2817_p13 = scmp.lt.s32.totalorder %s2815_s24, %s2808_s13 }
  0xa5   : > { %p2812_p10 = pneg %p2811_p1  ;;  %p2818_p0 = por %p2817_p13, %p2816_p6 }
  0xa7   : > { %p2819_p2 = pnand %p2818_p0, %p2812_p10 }
  0xa9   : > { %2822 = shalt.err (!%p2819_p2)
}
  0xaa   : > { %s2911_s1 = smov 128   ;;  %s2912_s29 = smov 8  }
  0xab   : > { %2553 = dma.hbm_to_vmem [thread:$0]  (!%p3197_p11), %s3195_s17, 256, %s3201_s10, %s3203_s18, %s2911_s1, %s2911_s1, %s2912_s29  }
  0xac   : > { %p3511_p8 = scmp.ne.s32.totalorder %s3502_s15, 0 }
  0xad   : > { %s3234_s19 = sand.u32 (!%p3511_p8), 1, %s2893_s26  }
  0xae   : > { %463 = sbr.rel (%p3511_p8) target bundleno = 1201 (0x4b1), region = 72  ;;  %s2206_s21 = sshll.u32 (!%p3511_p8), %s3234_s19, 4 }
  0xaf   : > { %s466_s13 = scalar_lea.sflag (!%p3511_p8), [#allocation3], %s3234_s19  ;;  %s469_s30 = scalar_lea.vmem (!%p3511_p8), [#allocation2], %s2206_s21 }
  0xb5   : > { %2868 = dma.done.wait (%p3177_p7), %s466_s13, 256  }
  0xb6   : > { %2870 = vsyncadd (%p3177_p7), %s466_s13, 4294967040  ;;  %p3512_p6 = scmp.eq.s32.totalorder %s3009_s14, 0 }
  0xb8   : > { %2872 = dma.done.wait (%p3512_p6), [#allocation6], 768   ;;  %p3513_p10 = pmov %p3512_p6 }
  0xb9   : > { %p3514_p11 = pmov %p3512_p6 }
  0xba   : > { %2874 = vsyncadd (%p3513_p10), [#allocation6], 4294966528 }
  0xbb   : > { %2876 = dma.done.wait (%p3514_p11), [#allocation9], 2560   ;;  %p3515_p3 = pmov %p3512_p6 }
  0xbd   : > { %2878 = vsyncadd (%p3515_p3), [#allocation9], 4294964736  ;;  %p3516_p5 = pmov %p3515_p3 }
  0xbe   : > { %p3517_p9 = pmov %p3515_p3 }
  0xbf   : > { %2880 = dma.done.wait (%p3516_p5), [#allocation12], 1280  }
  0xc0   : > { %2882 = vsyncadd (%p3517_p9), [#allocation12], 4294966016  ;;  %v2913_v0 = vmov 0.0   ;;  %vm2914_vm0 = vmmov 0   ;;  %v2615_v1 = vld [vmem:[#allocation5] sm:$0xff]   ;;  %v534_v3 = vld [vmem:[%s469_s30 + $0x8] sm:$0xff] }
  0xc1   : > { %2346 = vmatprep.subr.bf16.mxu0 %v2913_v0  ;;  %2348 = vmatprep.mubr.msk.bf16.mxu0 %vm2914_vm0, %v2913_v0  ;;  %v533_v2 = vld [vmem:[%s469_s30] sm:$0xff]  ;;  %vm551_vm1 = vcmask 130048   ;;  %vm598_vm2 = vcmask 1041408   ;;  %v600_v6 = vrot.slane %v534_v3, 6  ;;  %v2617_v8 = vld [vmem:[#allocation7] sm:$0xff]   ;;  %vm731_vm5 = vcmask 1046528  }
  0xc2   : > { %2352 = vmatprep.subr.bf16.mxu1 %v2913_v0  ;;  %2354 = vmatprep.mubr.msk.bf16.mxu1 %vm2914_vm0, %v2913_v0  ;;  %v535_v4 = vpack.c.bf16 %v534_v3, %v533_v2  ;;  %v599_v5 = vrot.slane %v533_v2, 6  ;;  %v2616_v7 = vld [vmem:[#allocation7 + $0x8] sm:$0xff]   ;;  %vm614_vm3 = vsmask.f32 7424  ;;  %vm790_vm4 = vsmask.f32 6400 }
  0xc3   : > { %2347 = vmatpush3.bf16.msra.mxu0 %v2615_v1  ;;  %v606_v11 = vsel %vm598_vm2, %v600_v6, 0.0  ;;  %2353 = vmatpush3.bf16.msra.mxu1 %v2616_v7  ;;  %v2619_v18 = vld [vmem:[#allocation7 + $0x18] sm:$0xff]   ;;  %v2618_v27 = vld [vmem:[#allocation7 + $0x10] sm:$0xff]   ;;  %vm855_vm6 = vcmask 1045504   ;;  %v2620_v34 = vld [vmem:[#allocation7 + $0x20] sm:$0xff]   ;;  %vm967_vm7 = vcmask 261120  }
  0xc4   : > { %2358 = vmatprep.subr.bf16.mxu0 %v2913_v0  ;;  %v601_v9 = vsel %vm598_vm2, %v599_v5, %v600_v6  ;;  %v605_v10 = vsel %vm598_vm2, 0.0, %v599_v5  ;;  %v608_v13 = vpack.c.bf16 %v606_v11, %v606_v11  ;;  %2364 = vmatprep.subr.bf16.mxu1 %v2913_v0  ;;  %v2621_v38 = vld [vmem:[#allocation8] sm:$0xff]   ;;  %v2622_v39 = vld [vmem:[#allocation8 + $0x8] sm:$0xff]   ;;  %v2623_v40 = vld [vmem:[#allocation8 + $0x10] sm:$0xff]   ;;  %s3518_s13 = sld [smem:[#allocation20_spill]]  ;;  %vm1358_vm8 = vcmask 1043456  }
  0xc5   : > { %v607_v12 = vpack.c.bf16 %v601_v9, %v605_v10  ;;  %v2625_v41 = vld [vmem:[#allocation8 + $0x18] sm:$0xff]   ;;  %v2226_v6 = vld [vmem:[%s3482_s4] ss:$0 sm:$0xff]  ;;  %vm1566_vm9 = vcmask 1044480   ;;  %s3519_s12 = sld [smem:[#allocation22_spill]]  ;;  %s3520_s20 = sld [smem:[#allocation23_spill]] }
  0xc6   : > { %2349 = vmatmul.mubr.msk.bf16.vlgmr.msra.gmra.mrb[0].mxu0 %vm551_vm1, %v535_v4  ;;  %v623_v16 = vshll.u32 %v608_v13, 16  ;;  %v733_v19 = vrot.slane %v608_v13, 1  ;;  %v794_v20 = vshrl.u32 %v608_v13, 16  ;;  %v857_v22 = vrot.slane %v608_v13, 2  ;;  %s3521_s24 = sld [smem:[#allocation21_spill]]  ;;  %s2285_s1 = sshll.u32 %s3009_s14, 8 }
  0xc7   : > { %2359 = vmatpush3.bf16.msra.mxu0 %v2617_v8  ;;  %2360 = vmatprep.mubr.msk.bf16.mxu0 %vm2914_vm0, %v2913_v0  ;;  %v616_v14 = vshrl.u32 %v607_v12, 16  ;;  %v618_v15 = vshll.u32 %v607_v12, 16  ;;  %v732_v17 = vrot.slane %v607_v12, 1  ;;  %v856_v21 = vrot.slane %v607_v12, 2  ;;  %s531_s29 = scalar_lea.vmem [#allocation13], %s2206_s21  ;;  %s2060_s14 = scalar_lea.sflag [#allocation4], %s3234_s19 }
  0xc8   : > { %2370 = vmatprep.subr.bf16.mxu0 %v2913_v0  ;;  %v625_v24 = vrot.slane %v623_v16, 1  ;;  %v797_v26 = vrot.slane %v623_v16, 2  ;;  %v796_v29 = vrot.slane %v794_v20, 1  ;;  %p3523_p4 = scmp.ne.s32.totalorder %s3508_s22, 0  ;;  %s2915_s10 = smov [#allocation13]  }
  0xc9   : > { %v620_v23 = vrot.slane %v618_v15, 1  ;;  %v791_v25 = vrot.slane %v616_v14, 1  ;;  %v792_v28 = vrot.slane %v618_v15, 2  ;;  %v734_v36 = vsel %vm731_vm5, %v732_v17, %v733_v19 }
  0xca   : > { %v798_v33 = vor.u32 %v797_v26, %v796_v29  ;;  %v858_v37 = vsel %vm855_vm6, %v856_v21, %v857_v22  ;;  %v2624_v21 = vld [vmem:[#allocation8 + $0x30] sm:$0xff]  }
  0xcb   : > { %v621_v30 = vor.u32 %v620_v23, %v616_v14  ;;  %v793_v32 = vor.u32 %v792_v28, %v791_v25  ;;  %v2626_v28 = vld [vmem:[#allocation8 + $0x38] sm:$0xff]  }
  0xcd   : > { %v626_v31 = vsel %vm614_vm3, %v621_v30, %v625_v24  ;;  %v799_v35 = vsel %vm790_vm4, %v793_v32, %v798_v33 }
  0xce   : > { %2361 = vmatmul.mubr.msk.bf16.vlgmr.msra.gmra.mrb[4].mxu0 %vm551_vm1, %v607_v12  ;;  %2355 = vmatmul.mubr.msk.bf16.vlgmr.msra.gmra.mrb[0].mxu1 %vm551_vm1, %v626_v31 }
  0xcf   : > { %2371 = vmatpush3.bf16.msra.mxu0 %v2619_v18  ;;  %2365 = vmatpush3.bf16.msra.mxu1 %v2618_v27 }
  0xd0   : > { %2366 = vmatprep.mubr.msk.bf16.mxu1 %vm2914_vm0, %v2913_v0  ;;  %2376 = vmatprep.subr.bf16.mxu1 %v2913_v0 }
  0xd1   : > { %2372 = vmatprep.mubr.msk.bf16.mxu0 %vm2914_vm0, %v2913_v0  ;;  %2382 = vmatprep.subr.bf16.mxu0 %v2913_v0 }
  0xd6   : > { %2373 = vmatmul.mubr.msk.bf16.vlgmr.msra.gmra.mrb[8].mxu0 %vm551_vm1, %v799_v35  ;;  %2367 = vmatmul.mubr.msk.bf16.vlgmr.msra.gmra.mrb[4].mxu1 %vm551_vm1, %v734_v36 }
  0xd7   : > { %2386 = vmatprep.mubr.msk.bf16.mxu0 %vm2914_vm0, %v2913_v0  ;;  %2377 = vmatpush3.bf16.msra.mxu1 %v2620_v34 }
  0xd8   : > { %2378 = vmatprep.mubr.msk.bf16.mxu1 %vm2914_vm0, %v2913_v0  ;;  %2390 = vmatprep.subr.bf16.mxu1 %v2913_v0 }
  0xd9   : > { %2383 = vmatpush3.bf16.msra.mxu0 %v2623_v40 }
  0xda   : > { %2384 = vmatprep.subr.bf16.mxu0 %v2913_v0 }
  0xdd   : > { %2385 = vmatpush3.bf16.msra.mxu0 %v2625_v41 }
  0xde   : > { %2379 = vmatmul.mubr.msk.bf16.vlgmr.msra.gmra.mrb[8].mxu1 %vm551_vm1, %v858_v37  ;;  %2398 = vmatprep.subr.bf16.mxu0 %v2913_v0 }
  0xdf   : > { %2394 = vmatprep.mubr.msk.bf16.mxu1 %vm2914_vm0, %v2913_v0  ;;  %2391 = vmatpush3.bf16.msra.mxu1 %v2621_v38 }
  0xe0   : > { %2392 = vmatprep.subr.bf16.mxu1 %v2913_v0 }
  0xe3   : > { %2393 = vmatpush3.bf16.msra.mxu1 %v2622_v39 }
  0xe4   : > { %2406 = vmatprep.subr.bf16.mxu1 %v2913_v0 }
 0x199   : > { %v3297_v42 = vpop.f32.mrb[0].mxu0 }
 0x19a   : > { %v2350_v43 = vpop.f32.mrb[1].mxu0 }
 0x19b   : > { %v3299_v44 = vpop.f32.mrb[2].mxu0  ;;  %v2627_v43 = vld [vmem:[#allocation8 + $0x20] sm:$0xff]  }
 0x19c   : > { %v2351_v45 = vpop.f32.mrb[3].mxu0 }
 0x1a1   : > { %v719_v46 = vpop.f32.mrb[4].mxu0  ;;  %v670_v47 = vpop.f32.mrb[0].mxu1 }
 0x1a2   : > { %v2362_v48 = vpop.f32.mrb[5].mxu0  ;;  %v2356_v49 = vpop.f32.mrb[1].mxu1  ;;  %v720_v50 = vadd.f32 %v719_v46, %v670_v47 }
 0x1a3   : > { %v722_v51 = vpop.f32.mrb[6].mxu0  ;;  %v673_v52 = vpop.f32.mrb[2].mxu1  ;;  %v2628_v49 = vld [vmem:[#allocation8 + $0x28] sm:$0xff]  }
 0x1a4   : > { %v2363_v53 = vpop.f32.mrb[7].mxu0  ;;  %v2357_v54 = vpop.f32.mrb[3].mxu1  ;;  %v723_v55 = vadd.f32 %v722_v51, %v673_v52  ;;  %v2630_v51 = vld [vmem:[#allocation8 + $0x48] sm:$0xff]   ;;  %v2631_v52 = vld [vmem:[%s3485_s7] sm:$0xff]  }
 0x1a5   : > { %v2632_v53 = vld [vmem:[%s3485_s7 + $0x8] sm:$0xff]   ;;  %v2633_v54 = vld [vmem:[#allocation10 + $0x10] sm:$0xff]  }
 0x1a9   : > { %v843_v56 = vpop.f32.mrb[8].mxu0  ;;  %v778_v57 = vpop.f32.mrb[4].mxu1 }
 0x1aa   : > { %v2374_v58 = vpop.f32.mrb[9].mxu0  ;;  %v785_v59 = vadd.f32 %v778_v57, %v720_v50  ;;  %v2368_v60 = vpop.f32.mrb[5].mxu1  ;;  %v2629_v50 = vld [vmem:[#allocation8 + $0x40] sm:$0xff]  }
 0x1ab   : > { %v846_v61 = vpop.f32.mrb[10].mxu0  ;;  %v781_v62 = vpop.f32.mrb[6].mxu1 }
 0x1ac   : > { %v2375_v63 = vpop.f32.mrb[11].mxu0  ;;  %v786_v1 = vadd.f32 %v781_v62, %v723_v55  ;;  %v850_v2 = vadd.f32 %v843_v56, %v785_v59  ;;  %v2369_v3 = vpop.f32.mrb[7].mxu1  ;;  %v2635_v55 = vld [vmem:[#allocation10 + $0x18] sm:$0xff]  }
 0x1ae   : > { %v851_v4 = vadd.f32 %v846_v61, %v786_v1 }
 0x1b1   : > { %v902_v5 = vpop.f32.mrb[8].mxu1 }
 0x1b2   : > { %v909_v7 = vadd.f32 %v902_v5, %v850_v2  ;;  %v2380_v8 = vpop.f32.mrb[9].mxu1 }
 0x1b3   : > { %v905_v9 = vpop.f32.mrb[10].mxu1 }
 0x1b4   : > { %v918_v10 = vadd.f32 %v2226_v6, %v909_v7  ;;  %v910_v11 = vadd.f32 %v905_v9, %v851_v4  ;;  %v2381_v12 = vpop.f32.mrb[11].mxu1 }
 0x1b6   : > { %v920_v13 = vmax.f32 %v918_v10, 0.0  ;;  %v919_v14 = vadd.f32 %v2226_v6, %v910_v11 }
 0x1b8   : > { %v924_v15 = vrot.slane %v920_v13, 6  ;;  %v921_v16 = vmax.f32 %v919_v14, 0.0 }
 0x1ba   : > { %v925_v17 = vrot.slane %v921_v16, 6  ;;  %v930_v18 = vsel %vm598_vm2, 0.0, %v924_v15  ;;  %v2242_v16 = vld [vmem:[%s3484_s6] ss:$0 sm:$0xff] }
 0x1bc   : > { %v926_v19 = vsel %vm598_vm2, %v924_v15, %v925_v17  ;;  %v931_v20 = vsel %vm598_vm2, %v925_v17, 0.0 }
 0x1bd   : > { %v932_v22 = vpack.c.bf16 %v926_v19, %v930_v18  ;;  %v933_v23 = vpack.c.bf16 %v931_v20, %v931_v20  ;;  %v2213_v19 = vld [vmem:[%s3518_s13] ss:$0 sm:$0xff]  ;;  %s2073_s13 = sshll.u32 %s531_s29, 4  ;;  %s3432_s13 = int_to_ptr.vmem [resolvable:$true] %s2073_s13 }
 0x1be   : > { %s2823_s21 = scalar_lea.vmem %s3432_s13, 256 }
 0x1bf   : > { %2395 = vmatmul.mubr.msk.bf16.vlgmr.msra.gmra.mrb[12].mxu1 %vm967_vm7, %v932_v22  ;;  %v944_v24 = vshrl.u32 %v932_v22, 16  ;;  %v946_v25 = vshll.u32 %v932_v22, 16  ;;  %v951_v26 = vshll.u32 %v933_v23, 16  ;;  %v1143_v27 = vshrl.u32 %v933_v23, 16  ;;  %p2824_p7 = scmp.ne.s32.totalorder %s3432_s13, %s2823_s21 }
 0x1c0   : > { %2407 = vmatpush3.bf16.msra.mxu1 %v2624_v21  ;;  %2410 = vmatprep.mubr.msk.bf16.mxu1 %vm2914_vm0, %v2913_v0  ;;  %v1074_v29 = vrot.slane %v932_v22, 1  ;;  %v1075_v30 = vrot.slane %v933_v23, 1  ;;  %v1212_v31 = vrot.slane %v932_v22, 2  ;;  %v1213_v32 = vrot.slane %v933_v23, 2 }
 0x1c1   : > { %2408 = vmatprep.subr.bf16.mxu1 %v2913_v0  ;;  %v948_v33 = vrot.slane %v946_v25, 1  ;;  %v1140_v34 = vrot.slane %v944_v24, 1  ;;  %v1141_v35 = vrot.slane %v946_v25, 2  ;;  %v1145_v36 = vrot.slane %v1143_v27, 1  ;;  %p2825_p12 = pnand %p2824_p7, %p3523_p4 }
 0x1c2   : > { %v1146_v37 = vrot.slane %v951_v26, 2  ;;  %v1076_v38 = vsel %vm731_vm5, %v1074_v29, %v1075_v30  ;;  %v1214_v39 = vsel %vm855_vm6, %v1212_v31, %v1213_v32  ;;  %v953_v41 = vrot.slane %v951_v26, 1 }
 0x1c3   : > { %v949_v40 = vor.u32 %v948_v33, %v944_v24  ;;  %v1142_v45 = vor.u32 %v1141_v35, %v1140_v34  ;;  %v590_v24 = vadd.f32 %v2213_v19, %v3297_v42  ;;  %v593_v27 = vadd.f32 %v2213_v19, %v3299_v44  ;;  %v2634_v34 = vld [vmem:[#allocation10] sm:$0xff]   ;;  %p2826_p1 = pneg %p2825_p12 }
 0x1c4   : > { %2409 = vmatpush3.bf16.msra.mxu1 %v2626_v28  ;;  %v1147_v46 = vor.u32 %v1146_v37, %v1145_v36 }
 0x1c5   : > { %v954_v47 = vsel %vm614_vm3, %v949_v40, %v953_v41  ;;  %2422 = vmatprep.subr.bf16.mxu1 %v2913_v0  ;;  %v2636_v40 = vld [vmem:[#allocation10 + $0x8] sm:$0xff]  }
 0x1c6   : > { %2387 = vmatmul.mubr.msk.bf16.vlgmr.msra.gmra.mrb[12].mxu0 %vm967_vm7, %v954_v47  ;;  %v1148_v48 = vsel %vm790_vm4, %v1142_v45, %v1147_v46  ;;  %v2637_v45 = vld [vmem:[#allocation10 + $0x20] sm:$0xff]  }
 0x1c7   : > { %2399 = vmatpush3.bf16.msra.mxu0 %v2627_v43  ;;  %2411 = vmatmul.mubr.msk.bf16.vlgmr.msra.gmra.mrb[16].mxu1 %vm967_vm7, %v1148_v48 }
 0x1c8   : > { %2400 = vmatprep.subr.bf16.mxu0 %v2913_v0  ;;  %2402 = vmatprep.mubr.msk.bf16.mxu0 %vm2914_vm0, %v2913_v0 }
 0x1c9   : > { %2426 = vmatprep.mubr.msk.bf16.mxu1 %vm2914_vm0, %v2913_v0  ;;  %2423 = vmatpush3.bf16.msra.mxu1 %v2631_v52 }
 0x1ca   : > { %2424 = vmatprep.subr.bf16.mxu1 %v2913_v0 }
 0x1cb   : > { %2401 = vmatpush3.bf16.msra.mxu0 %v2628_v49 }
 0x1cc   : > { %2414 = vmatprep.subr.bf16.mxu0 %v2913_v0 }
 0x1cd   : > { %2425 = vmatpush3.bf16.msra.mxu1 %v2632_v53  ;;  %v2638_v53 = vld [vmem:[#allocation10 + $0x30] sm:$0xff]  }
 0x1ce   : > { %2403 = vmatmul.mubr.msk.bf16.vlgmr.msra.gmra.mrb[16].mxu0 %vm967_vm7, %v1076_v38  ;;  %2438 = vmatprep.subr.bf16.mxu1 %v2913_v0 }
 0x1cf   : > { %2415 = vmatpush3.bf16.msra.mxu0 %v2629_v50  ;;  %2418 = vmatprep.mubr.msk.bf16.mxu0 %vm2914_vm0, %v2913_v0 }
 0x1d0   : > { %2416 = vmatprep.subr.bf16.mxu0 %v2913_v0 }
 0x1d3   : > { %2417 = vmatpush3.bf16.msra.mxu0 %v2630_v51 }
 0x1d4   : > { %2430 = vmatprep.subr.bf16.mxu0 %v2913_v0 }
 0x1d6   : > { %2419 = vmatmul.mubr.msk.bf16.vlgmr.msra.gmra.mrb[20].mxu0 %vm967_vm7, %v1214_v39 }
 0x1d7   : > { %2434 = vmatprep.mubr.msk.bf16.mxu0 %vm2914_vm0, %v2913_v0  ;;  %2431 = vmatpush3.bf16.msra.mxu0 %v2633_v54 }
 0x1d8   : > { %2432 = vmatprep.subr.bf16.mxu0 %v2913_v0 }
 0x1db   : > { %2433 = vmatpush3.bf16.msra.mxu0 %v2635_v55 }
 0x1dc   : > { %2446 = vmatprep.subr.bf16.mxu0 %v2913_v0 }
 0x292   : > { %v1060_v56 = vpop.f32.mrb[12].mxu1 }
 0x293   : > { %v2396_v57 = vpop.f32.mrb[13].mxu1 }
 0x294   : > { %v1063_v58 = vpop.f32.mrb[14].mxu1  ;;  %v2639_v57 = vld [vmem:[#allocation10 + $0x28] sm:$0xff]  }
 0x295   : > { %v2397_v59 = vpop.f32.mrb[15].mxu1 }
 0x296   : > { %v2641_v59 = vld [vmem:[#allocation10 + $0x40] sm:$0xff]  }
 0x299   : > { %v1005_v60 = vpop.f32.mrb[12].mxu0 }
 0x29a   : > { %v1061_v61 = vadd.f32 %v1060_v56, %v1005_v60  ;;  %v2388_v62 = vpop.f32.mrb[13].mxu0  ;;  %v1198_v63 = vpop.f32.mrb[16].mxu1  ;;  %v2642_v60 = vld [vmem:[#allocation10 + $0x48] sm:$0xff]  }
 0x29b   : > { %v1008_v1 = vpop.f32.mrb[14].mxu0  ;;  %v2412_v2 = vpop.f32.mrb[17].mxu1  ;;  %v2644_v62 = vld [vmem:[#allocation11 + $0x10] sm:$0xff]  }
 0x29c   : > { %v1064_v3 = vadd.f32 %v1063_v58, %v1008_v1  ;;  %v2389_v4 = vpop.f32.mrb[15].mxu0  ;;  %v1201_v5 = vpop.f32.mrb[18].mxu1  ;;  %v2640_v58 = vld [vmem:[#allocation10 + $0x38] sm:$0xff]   ;;  %v2646_v1 = vld [vmem:[#allocation11 + $0x18] sm:$0xff]  }
 0x29d   : > { %v2413_v6 = vpop.f32.mrb[19].mxu1 }
 0x2a1   : > { %v1126_v7 = vpop.f32.mrb[16].mxu0 }
 0x2a2   : > { %v1133_v8 = vadd.f32 %v1126_v7, %v1061_v61  ;;  %v2404_v9 = vpop.f32.mrb[17].mxu0  ;;  %v2643_v61 = vld [vmem:[#allocation11] sm:$0xff]  }
 0x2a3   : > { %v1129_v10 = vpop.f32.mrb[18].mxu0 }
 0x2a4   : > { %v1134_v11 = vadd.f32 %v1129_v10, %v1064_v3  ;;  %v2405_v12 = vpop.f32.mrb[19].mxu0  ;;  %v1205_v13 = vadd.f32 %v1198_v63, %v1133_v8  ;;  %v2645_v63 = vld [vmem:[#allocation11 + $0x8] sm:$0xff]  }
 0x2a6   : > { %v1206_v14 = vadd.f32 %v1201_v5, %v1134_v11 }
 0x2a9   : > { %v1264_v15 = vpop.f32.mrb[20].mxu0 }
 0x2aa   : > { %v1271_v17 = vadd.f32 %v1264_v15, %v1205_v13  ;;  %v2420_v18 = vpop.f32.mrb[21].mxu0 }
 0x2ab   : > { %v1267_v20 = vpop.f32.mrb[22].mxu0 }
 0x2ac   : > { %v1280_v21 = vadd.f32 %v2242_v16, %v1271_v17  ;;  %v1272_v22 = vadd.f32 %v1267_v20, %v1206_v14  ;;  %v2421_v23 = vpop.f32.mrb[23].mxu0 }
 0x2ae   : > { %v1282_v25 = vmax.f32 %v1280_v21, 0.0  ;;  %v1281_v26 = vadd.f32 %v2242_v16, %v1272_v22 }
 0x2b0   : > { %v1284_v28 = vadd.f32 %v1282_v25, %v590_v24  ;;  %v1283_v29 = vmax.f32 %v1281_v26, 0.0 }
 0x2b2   : > { %v1286_v30 = vmax.f32 %v1284_v28, 0.0  ;;  %v1285_v31 = vadd.f32 %v1283_v29, %v593_v27  ;;  %v2262_v29 = vld [vmem:[%s3519_s12] ss:$0 sm:$0xff]  ;;  %s3522_s12 = sld [smem:[#allocation24_spill]] }
 0x2b4   : > { %v1359_v32 = vrot.slane %v1286_v30, 4  ;;  %v1287_v33 = vmax.f32 %v1285_v31, 0.0 }
 0x2b6   : > { %v1288_v35 = vpack.c.bf16 %v1287_v33, %v1286_v30  ;;  %v1360_v36 = vrot.slane %v1287_v33, 4  ;;  %v1365_v37 = vsel %vm1358_vm8, 0.0, %v1359_v32 }
 0x2b8   : > { %v1361_v38 = vsel %vm1358_vm8, %v1359_v32, %v1360_v36  ;;  %v1366_v42 = vsel %vm1358_vm8, %v1360_v36, 0.0  ;;  %2427 = vmatmul.mubr.msk.bf16.vlgmr.msra.gmra.mrb[20].mxu1 %vm967_vm7, %v1288_v35  ;;  %s3430_s17 = scalar_lea.hbm %s3522_s12, %s2285_s1 }
 0x2b9   : > { %v1367_v39 = vpack.c.bf16 %v1361_v38, %v1365_v37  ;;  %v1368_v44 = vpack.c.bf16 %v1366_v42, %v1366_v42  ;;  %2439 = vmatpush3.bf16.msra.mxu1 %v2634_v34  ;;  %2442 = vmatprep.mubr.msk.bf16.mxu1 %vm2914_vm0, %v2913_v0 }
 0x2ba   : > { %2440 = vmatprep.subr.bf16.mxu1 %v2913_v0 }
 0x2bb   : > { %v1380_v41 = vrot.slane %v1367_v39, 1  ;;  %v1381_v43 = vrot.slane %v1368_v44, 1  ;;  %v1500_v46 = vrot.slane %v1367_v39, 2  ;;  %v1501_v47 = vrot.slane %v1368_v44, 2 }
 0x2bc   : > { %v1567_v48 = vrot.slane %v1367_v39, 3  ;;  %v1568_v49 = vrot.slane %v1368_v44, 3  ;;  %v1634_v50 = vrot.slane %v1367_v39, 4  ;;  %v1635_v51 = vrot.slane %v1368_v44, 4 }
 0x2bd   : > { %2441 = vmatpush3.bf16.msra.mxu1 %v2636_v40  ;;  %v1382_v52 = vsel %vm731_vm5, %v1380_v41, %v1381_v43  ;;  %v1502_v54 = vsel %vm855_vm6, %v1500_v46, %v1501_v47  ;;  %v2647_v43 = vld [vmem:[#allocation11 + $0x30] sm:$0xff]  }
 0x2be   : > { %2435 = vmatmul.mubr.msk.bf16.vlgmr.msra.gmra.mrb[24].mxu0 %vm967_vm7, %v1382_v52  ;;  %2454 = vmatprep.subr.bf16.mxu1 %v2913_v0  ;;  %v1569_v55 = vsel %vm1566_vm9, %v1567_v48, %v1568_v49  ;;  %v1636_v56 = vsel %vm1358_vm8, %v1634_v50, %v1635_v51  ;;  %v2648_v49 = vld [vmem:[#allocation11 + $0x20] sm:$0xff]   ;;  %v2649_v52 = vld [vmem:[#allocation11 + $0x38] sm:$0xff]  }
 0x2bf   : > { %2447 = vmatpush3.bf16.msra.mxu0 %v2637_v45  ;;  %2450 = vmatprep.mubr.msk.bf16.mxu0 %vm2914_vm0, %v2913_v0 }
 0x2c0   : > { %2443 = vmatmul.mubr.msk.bf16.vlgmr.msra.gmra.mrb[24].mxu1 %vm967_vm7, %v1367_v39  ;;  %2448 = vmatprep.subr.bf16.mxu0 %v2913_v0 }
 0x2c1   : > { %2455 = vmatpush3.bf16.msra.mxu1 %v2638_v53  ;;  %2458 = vmatprep.mubr.msk.bf16.mxu1 %vm2914_vm0, %v2913_v0 }
 0x2c2   : > { %2456 = vmatprep.subr.bf16.mxu1 %v2913_v0 }
 0x2c3   : > { %2449 = vmatpush3.bf16.msra.mxu0 %v2639_v57 }
 0x2c4   : > { %2462 = vmatprep.subr.bf16.mxu0 %v2913_v0 }
 0x2c5   : > { %2457 = vmatpush3.bf16.msra.mxu1 %v2640_v58 }
 0x2c6   : > { %2451 = vmatmul.mubr.msk.bf16.vlgmr.msra.gmra.mrb[28].mxu0 %vm967_vm7, %v1502_v54  ;;  %2470 = vmatprep.subr.bf16.mxu1 %v2913_v0 }
 0x2c7   : > { %2463 = vmatpush3.bf16.msra.mxu0 %v2641_v59  ;;  %2466 = vmatprep.mubr.msk.bf16.mxu0 %vm2914_vm0, %v2913_v0 }
 0x2c8   : > { %2459 = vmatmul.mubr.msk.bf16.vlgmr.msra.gmra.mrb[28].mxu1 %vm967_vm7, %v1569_v55  ;;  %2464 = vmatprep.subr.bf16.mxu0 %v2913_v0 }
 0x2c9   : > { %2474 = vmatprep.mubr.msk.bf16.mxu1 %vm2914_vm0, %v2913_v0  ;;  %2471 = vmatpush3.bf16.msra.mxu1 %v2644_v62  ;;  %v2651_v62 = vld [vmem:[#allocation11 + $0x40] sm:$0xff]  }
 0x2ca   : > { %2472 = vmatprep.subr.bf16.mxu1 %v2913_v0 }
 0x2cb   : > { %2465 = vmatpush3.bf16.msra.mxu0 %v2642_v60 }
 0x2cc   : > { %2478 = vmatprep.subr.bf16.mxu0 %v2913_v0 }
 0x2cd   : > { %2473 = vmatpush3.bf16.msra.mxu1 %v2646_v1 }
 0x2ce   : > { %2467 = vmatmul.mubr.msk.bf16.vlgmr.msra.gmra.mrb[32].mxu0 %vm967_vm7, %v1636_v56  ;;  %2486 = vmatprep.subr.bf16.mxu1 %v2913_v0 }
 0x2cf   : > { %2482 = vmatprep.mubr.msk.bf16.mxu0 %vm2914_vm0, %v2913_v0  ;;  %2479 = vmatpush3.bf16.msra.mxu0 %v2643_v61  ;;  %v2650_v61 = vld [vmem:[#allocation11 + $0x28] sm:$0xff]  }
 0x2d0   : > { %2480 = vmatprep.subr.bf16.mxu0 %v2913_v0 }
 0x2d3   : > { %2481 = vmatpush3.bf16.msra.mxu0 %v2645_v63  ;;  %v2652_v63 = vld [vmem:[#allocation11 + $0x48] sm:$0xff]  }
 0x2d4   : > { %2494 = vmatprep.subr.bf16.mxu0 %v2913_v0 }
 0x38b   : > { %v3387_v2 = vpop.f32.mrb[20].mxu1 }
 0x38c   : > { %v2428_v3 = vpop.f32.mrb[21].mxu1 }
 0x38d   : > { %v3389_v4 = vpop.f32.mrb[22].mxu1 }
 0x38e   : > { %v2429_v5 = vpop.f32.mrb[23].mxu1 }
 0x391   : > { %v1432_v6 = vpop.f32.mrb[24].mxu0 }
 0x392   : > { %v2436_v7 = vpop.f32.mrb[25].mxu0 }
 0x393   : > { %v1435_v8 = vpop.f32.mrb[26].mxu0  ;;  %v1488_v9 = vpop.f32.mrb[24].mxu1 }
 0x394   : > { %v1489_v10 = vadd.f32 %v1488_v9, %v1432_v6  ;;  %v2437_v11 = vpop.f32.mrb[27].mxu0  ;;  %v2444_v12 = vpop.f32.mrb[25].mxu1 }
 0x395   : > { %v1491_v13 = vpop.f32.mrb[26].mxu1 }
 0x396   : > { %v1492_v14 = vadd.f32 %v1491_v13, %v1435_v8  ;;  %v2445_v15 = vpop.f32.mrb[27].mxu1 }
 0x399   : > { %v1552_v16 = vpop.f32.mrb[28].mxu0 }
 0x39a   : > { %v1559_v17 = vadd.f32 %v1552_v16, %v1489_v10  ;;  %v2452_v18 = vpop.f32.mrb[29].mxu0 }
 0x39b   : > { %v1555_v19 = vpop.f32.mrb[30].mxu0  ;;  %v1619_v20 = vpop.f32.mrb[28].mxu1 }
 0x39c   : > { %v1560_v21 = vadd.f32 %v1555_v19, %v1492_v14  ;;  %v1626_v22 = vadd.f32 %v1619_v20, %v1559_v17  ;;  %v2453_v23 = vpop.f32.mrb[31].mxu0  ;;  %v2460_v24 = vpop.f32.mrb[29].mxu1 }
 0x39d   : > { %v1622_v25 = vpop.f32.mrb[30].mxu1 }
 0x39e   : > { %v1627_v26 = vadd.f32 %v1622_v25, %v1560_v21  ;;  %v2461_v27 = vpop.f32.mrb[31].mxu1  ;;  %v2278_v25 = vld [vmem:[%s3520_s20] ss:$0 sm:$0xff]  ;;  %s2827_s20 = sshll.u32 %s2915_s10, 4  ;;  %s2828_s20 = int_to_ptr.vmem [resolvable:$false] %s2827_s20 }
 0x39f   : > { %s2829_s18 = scalar_lea.vmem %s2828_s20, 512  ;;  %p2830_p13 = scmp.lt.s32.totalorder %s3432_s13, %s2828_s20 }
 0x3a0   : > { %p2831_p0 = scmp.lt.s32.totalorder %s2829_s18, %s2823_s21 }
 0x3a1   : > { %v1686_v28 = vpop.f32.mrb[32].mxu0 }
 0x3a2   : > { %v1693_v30 = vadd.f32 %v1686_v28, %v1626_v22  ;;  %v2468_v31 = vpop.f32.mrb[33].mxu0  ;;  %v2243_v28 = vld [vmem:[%s3521_s24] ss:$0 sm:$0xff]  ;;  %p2832_p2 = por %p2831_p0, %p2830_p13 }
 0x3a3   : > { %v1689_v32 = vpop.f32.mrb[34].mxu0 }
 0x3a4   : > { %v1702_v33 = vadd.f32 %v2262_v29, %v1693_v30  ;;  %v1694_v34 = vadd.f32 %v1689_v32, %v1627_v26  ;;  %v2469_v35 = vpop.f32.mrb[35].mxu0  ;;  %p2833_p8 = pnand %p2832_p2, %p2826_p1 }
 0x3a6   : > { %v1704_v36 = vmax.f32 %v1702_v33, 0.0  ;;  %v1703_v37 = vadd.f32 %v2262_v29, %v1694_v34  ;;  %v1350_v33 = vadd.f32 %v2243_v28, %v3387_v2 }
 0x3a8   : > { %v1708_v38 = vrot.slane %v1704_v36, 4  ;;  %v1705_v42 = vmax.f32 %v1703_v37, 0.0  ;;  %v1353_v36 = vadd.f32 %v2243_v28, %v3389_v4 }
 0x3aa   : > { %v1709_v39 = vrot.slane %v1705_v42, 4  ;;  %v1714_v44 = vsel %vm1358_vm8, 0.0, %v1708_v38 }
 0x3ac   : > { %v1710_v40 = vsel %vm1358_vm8, %v1708_v38, %v1709_v39  ;;  %v1715_v41 = vsel %vm1358_vm8, %v1709_v39, 0.0 }
 0x3ad   : > { %v1716_v45 = vpack.c.bf16 %v1710_v40, %v1714_v44  ;;  %v1717_v46 = vpack.c.bf16 %v1715_v41, %v1715_v41 }
 0x3af   : > { %2483 = vmatmul.mubr.msk.bf16.vlgmr.msra.gmra.mrb[36].mxu0 %vm967_vm7, %v1716_v45  ;;  %v1729_v47 = vrot.slane %v1716_v45, 1  ;;  %v1730_v48 = vrot.slane %v1717_v46, 1  ;;  %v1915_v50 = vrot.slane %v1716_v45, 3  ;;  %v1916_v51 = vrot.slane %v1717_v46, 3 }
 0x3b0   : > { %2495 = vmatpush3.bf16.msra.mxu0 %v2647_v43  ;;  %2498 = vmatprep.mubr.msk.bf16.mxu0 %vm2914_vm0, %v2913_v0  ;;  %v1849_v53 = vrot.slane %v1716_v45, 2  ;;  %v1850_v54 = vrot.slane %v1717_v46, 2  ;;  %v1981_v55 = vrot.slane %v1716_v45, 4  ;;  %v1982_v56 = vrot.slane %v1717_v46, 4 }
 0x3b1   : > { %v1731_v57 = vsel %vm731_vm5, %v1729_v47, %v1730_v48  ;;  %2496 = vmatprep.subr.bf16.mxu0 %v2913_v0  ;;  %v1917_v58 = vsel %vm1566_vm9, %v1915_v50, %v1916_v51 }
 0x3b2   : > { %2475 = vmatmul.mubr.msk.bf16.vlgmr.msra.gmra.mrb[32].mxu1 %vm967_vm7, %v1731_v57  ;;  %v1851_v59 = vsel %vm855_vm6, %v1849_v53, %v1850_v54  ;;  %v1983_v60 = vsel %vm1358_vm8, %v1981_v55, %v1982_v56 }
 0x3b3   : > { %2487 = vmatpush3.bf16.msra.mxu1 %v2648_v49  ;;  %2490 = vmatprep.mubr.msk.bf16.mxu1 %vm2914_vm0, %v2913_v0 }
 0x3b4   : > { %2497 = vmatpush3.bf16.msra.mxu0 %v2649_v52  ;;  %2488 = vmatprep.subr.bf16.mxu1 %v2913_v0 }
 0x3b7   : > { %2489 = vmatpush3.bf16.msra.mxu1 %v2650_v61  ;;  %2499 = vmatmul.mubr.msk.bf16.vlgmr.msra.gmra.mrb[40].mxu0 %vm967_vm7, %v1917_v58 }
 0x3b8   : > { %2502 = vmatprep.subr.bf16.mxu1 %v2913_v0 }
 0x3ba   : > { %2491 = vmatmul.mubr.msk.bf16.vlgmr.msra.gmra.mrb[36].mxu1 %vm967_vm7, %v1851_v59 }
 0x3bb   : > { %2503 = vmatpush3.bf16.msra.mxu1 %v2651_v62  ;;  %2506 = vmatprep.mubr.msk.bf16.mxu1 %vm2914_vm0, %v2913_v0 }
 0x3bc   : > { %2504 = vmatprep.subr.bf16.mxu1 %v2913_v0 }
 0x3bf   : > { %2505 = vmatpush3.bf16.msra.mxu1 %v2652_v63 }
 0x3c2   : > { %2507 = vmatmul.mubr.msk.bf16.vlgmr.msra.gmra.mrb[40].mxu1 %vm967_vm7, %v1983_v60 }
 0x482   : > { %v1837_v1 = vpop.f32.mrb[36].mxu0 }
 0x483   : > { %v2484_v3 = vpop.f32.mrb[37].mxu0 }
 0x484   : > { %v1840_v5 = vpop.f32.mrb[38].mxu0 }
 0x485   : > { %v1781_v6 = vpop.f32.mrb[32].mxu1  ;;  %v2485_v7 = vpop.f32.mrb[39].mxu0 }
 0x486   : > { %v1838_v8 = vadd.f32 %v1837_v1, %v1781_v6  ;;  %v2476_v9 = vpop.f32.mrb[33].mxu1 }
 0x487   : > { %v1784_v10 = vpop.f32.mrb[34].mxu1 }
 0x488   : > { %v1841_v11 = vadd.f32 %v1840_v5, %v1784_v10  ;;  %v2477_v12 = vpop.f32.mrb[35].mxu1 }
 0x48a   : > { %v1967_v13 = vpop.f32.mrb[40].mxu0 }
 0x48b   : > { %v2500_v14 = vpop.f32.mrb[41].mxu0 }
 0x48c   : > { %v1970_v15 = vpop.f32.mrb[42].mxu0 }
 0x48d   : > { %v1901_v16 = vpop.f32.mrb[36].mxu1  ;;  %v2501_v17 = vpop.f32.mrb[43].mxu0 }
 0x48e   : > { %v1908_v18 = vadd.f32 %v1901_v16, %v1838_v8  ;;  %v2492_v0 = vpop.f32.mrb[37].mxu1 }
 0x48f   : > { %v1904_v19 = vpop.f32.mrb[38].mxu1 }
 0x490   : > { %v1909_v20 = vadd.f32 %v1904_v19, %v1841_v11  ;;  %v2493_v21 = vpop.f32.mrb[39].mxu1  ;;  %v1974_v22 = vadd.f32 %v1967_v13, %v1908_v18 }
 0x492   : > { %v1975_v23 = vadd.f32 %v1970_v15, %v1909_v20 }
 0x495   : > { %v2033_v24 = vpop.f32.mrb[40].mxu1 }
 0x496   : > { %v2040_v26 = vadd.f32 %v2033_v24, %v1974_v22  ;;  %v2508_v27 = vpop.f32.mrb[41].mxu1 }
 0x497   : > { %v2036_v29 = vpop.f32.mrb[42].mxu1 }
 0x498   : > { %v2049_v30 = vadd.f32 %v2278_v25, %v2040_v26  ;;  %v2041_v31 = vadd.f32 %v2036_v29, %v1975_v23  ;;  %v2509_v32 = vpop.f32.mrb[43].mxu1 }
 0x49a   : > { %v2051_v34 = vmax.f32 %v2049_v30, 0.0  ;;  %v2050_v35 = vadd.f32 %v2278_v25, %v2041_v31 }
 0x49c   : > { %v2053_v37 = vadd.f32 %v2051_v34, %v1350_v33  ;;  %v2052_v38 = vmax.f32 %v2050_v35, 0.0 }
 0x49e   : > { %v2055_v42 = vmax.f32 %v2053_v37, 0.0  ;;  %v2054_v39 = vadd.f32 %v2052_v38, %v1353_v36 }
 0x4a0   : > { %2057 = vst.msk [vmem:[%s531_s29] sm:$0xff] %vm967_vm7, %v2055_v42  ;;  %v2056_v2 = vmax.f32 %v2054_v39, 0.0 }
 0x4a2   : > { %2058 = vst.msk [vmem:[%s531_s29 + $0x8] sm:$0xff] %vm967_vm7, %v2056_v2 }
 0x4a3   : > { %2836 = shalt.err (!%p2833_p8)
}
 0x4a4   : > { %s2837_s2 = scalar_lea.hbm %s3430_s17, 256  ;;  %s2841_s29 = scalar_lea.hbm %s3522_s12, 512 }
 0x4a5   : > { %p2838_p6 = scmp.ne.s32.totalorder %s3430_s17, %s2837_s2  ;;  %p2842_p3 = scmp.lt.u32.totalorder %s3430_s17, %s3522_s12 }
 0x4a6   : > { %p2843_p5 = scmp.lt.u32.totalorder %s2841_s29, %s2837_s2  ;;  %p2845_p7 = scmp.lt.u32.totalorder %s2837_s2, %s3430_s17 }
 0x4a7   : > { %p2839_p10 = pnand %p2838_p6, %p3523_p4 }
 0x4a8   : > { %p2844_p9 = por %p2843_p5, %p2842_p3 }
 0x4a9   : > { %p2840_p11 = pneg %p2839_p10 }
 0x4aa   : > { %p2846_p12 = por %p2845_p7, %p2844_p9 }
 0x4ac   : > { %p2847_p1 = pnand %p2846_p12, %p2840_p11 }
 0x4ae   : > { %2850 = shalt.err (!%p2847_p1)
}
 0x4af   : > { %s2916_s21 = smov 128   ;;  %s2917_s10 = smov 8  }
 0x4b0   : > { %2532 = dma.vmem_to_hbm [thread:$0]  (%p3523_p4), %s3432_s13, 256, %s3430_s17, %s2060_s14, %s2916_s21, %s2916_s21, %s2917_s10  }
 0x4b1 PF: > { %s2088_s20 = sand.u32 1, %s2889_s25   ;;  %p3524_p13 = scmp.ne.s32.totalorder %s3509_s23, 0 }
 0x4b2   : > { %p3525_p0 = scmp.ge.s32.totalorder %s2901_s28, 2  ;;  %s2089_s18 = scalar_lea.sflag [#allocation4], %s2088_s20 }
 0x4b4   : > { %p2555_p2 = pnand %p3525_p0, %p3524_p13 }
 0x4b6   : > { %2884 = dma.done.wait (!%p2555_p2), %s2089_s18, 256  }
 0x4b7   : > { %2886 = vsyncadd (!%p2555_p2), %s2089_s18, 4294967040  ;;  %p29_p8 = scmp.ge.s32.totalorder %s3161_s16, 4   ;;  %s3526_s25 = smov %s2893_s26 }
 0x4b8   : > { %s3527_s26 = smov %s2897_s27  ;;  %s3528_s27 = smov %s3173_s8 }
 0x4b9   : > { %s3529_s28 = smov %s3161_s16  ;;  %31 = sbr.rel (!%p29_p8) target bundleno = 15 (0xf), region = 153 }
 0x4c0   :  { %2094 = vsyncpa [#allocation3], 1 }
 0x4c1   :  { %2096 = vsyncpa [#allocation3 + $0x1], 1 }
 0x4c2   :  { %2097 = vsyncpa [#allocation6], 1 }
 0x4c3   :  { %2098 = vsyncpa [#allocation9], 1 }
 0x4c4   :  { %2099 = vsyncpa [#allocation12], 1 }
 0x4c5   :  { %2100 = vsyncpa [#allocation4], 1 }
 0x4c6   :  { %2102 = vsyncpa [#allocation4 + $0x1], 1 }

</bundles_post_ra>
